<compile_context>
chip_gen: v7x
topology: tpu7x:2x2x1
jax: 0.10.0
libtpu: 0.0.40
codegen_flags: <defaults>
</compile_context>

<pallas_src>
import jax
import jax.numpy as jnp
from jax import lax
from jax.experimental import pallas as pl
from jax.experimental.pallas import tpu as pltpu

_NEG = -1e30  # padded tag columns (must be very negative, NOT zero, for log_softmax)


def lstm_tagger_kernel(idx_ref, embproj_ref, whh_ref, wout_ref, bout_ref, out_ref):
    seq, Tp = out_ref.shape
    Hp = whh_ref.shape[0]            # padded hidden width (128)

    # ---- 1. fused gather of precomputed x-gates (emb @ W_ih^T + bias) ----
    # Rows are 4*Hp = 512 lanes dense and independent of the recurrence, so
    # these loads overlap with the serial MXU work below.
    gx = [embproj_ref[pl.ds(idx_ref[t], 1), :] for t in range(seq)]   # each (1, 4Hp)

    # ---- 2. serial recurrence, fully unrolled; everything stays in vregs ----
    h = jnp.zeros((1, Hp), jnp.float32)      # nn.LSTM default zero (h0, c0)
    c = jnp.zeros((1, Hp), jnp.float32)
    hs = []
    for t in range(seq):
        gates = gx[t] + jnp.dot(h, whh_ref[...],
                                preferred_element_type=jnp.float32)   # (1, 4Hp)
        # 3 EUP pushes per step: wide sigmoid, tanh(g), tanh(c).
        s = jax.nn.sigmoid(gates)
        i = s[:, 0 * Hp:1 * Hp]
        f = s[:, 1 * Hp:2 * Hp]
        o = s[:, 3 * Hp:4 * Hp]
        g = jnp.tanh(gates[:, 2 * Hp:3 * Hp])
        c = f * c + i * g
        h = o * jnp.tanh(c)
        hs.append(h)

    hist = jnp.concatenate(hs, axis=0)                                # (seq, Hp)

    # ---- 3. lane-dense epilogue: tag projection + log_softmax, one store ----
    tag = (jnp.dot(hist, wout_ref[...], preferred_element_type=jnp.float32)
           + bout_ref[...])                                           # (seq, Tp)
    m = jnp.max(tag, axis=-1, keepdims=True)
    z = tag - m
    lse = jnp.log(jnp.sum(jnp.exp(z), axis=-1, keepdims=True))
    out_ref[...] = z - lse


def _scatter_gate_cols(w_t, H, Hp):
    """(rows, 4H) -> (rows, 4Hp): each gate block starts at a 128-lane boundary,
    padded columns are zero."""
    rows = w_t.shape[0]
    out = jnp.zeros((rows, 4 * Hp), jnp.float32)
    for g in range(4):
        out = out.at[:, g * Hp:g * Hp + H].set(w_t[:, g * H:(g + 1) * H])
    return out


def lstm_tagger_forward(input_words, emb_w, w_ih, w_hh, b_ih, b_hh, w_out, b_out):
    seq = int(input_words.shape[0])
    H = w_hh.shape[1]
    T = w_out.shape[0]
    Hp = 128                                  # pad hidden to one full vreg lane-width
    Tp = 128                                  # pad tag dim for a lane-dense epilogue

    # --- host-side weight prep (done once per call, off the kernel's path) ---
    wih_p = _scatter_gate_cols(jnp.asarray(w_ih, jnp.float32).T, H, Hp)     # (E, 4Hp)
    b_p = _scatter_gate_cols(
        (jnp.asarray(b_ih, jnp.float32) + jnp.asarray(b_hh, jnp.float32)
         ).reshape(1, 4 * H), H, Hp)                                        # (1, 4Hp)
    # Fold embedding lookup + input projection + bias into ONE table.
    # (bias folded here exactly once; kernel does NOT add it again)
    emb_proj = jnp.asarray(emb_w, jnp.float32) @ wih_p + b_p                # (V, 4Hp)

    whh_p = jnp.zeros((Hp, 4 * Hp), jnp.float32).at[:H, :].set(
        _scatter_gate_cols(jnp.asarray(w_hh, jnp.float32).T, H, Hp))        # (Hp, 4Hp)
    wout_p = jnp.zeros((Hp, Tp), jnp.float32).at[:H, :T].set(
        jnp.asarray(w_out, jnp.float32).T)                                  # (Hp, Tp)
    bout_p = jnp.full((1, Tp), _NEG, jnp.float32).at[0, :T].set(
        jnp.asarray(b_out, jnp.float32))                                    # (1, Tp)

    out = pl.pallas_call(
        lstm_tagger_kernel,
        out_shape=jax.ShapeDtypeStruct((seq, Tp), jnp.float32),
        in_specs=[
            pl.BlockSpec(memory_space=pltpu.MemorySpace.SMEM),   # word indices
            pl.BlockSpec(memory_space=pltpu.MemorySpace.VMEM),   # emb @ W_ih^T + b
            pl.BlockSpec(memory_space=pltpu.MemorySpace.VMEM),   # W_hh^T (padded)
            pl.BlockSpec(memory_space=pltpu.MemorySpace.VMEM),   # W_out^T (padded)
            pl.BlockSpec(memory_space=pltpu.MemorySpace.VMEM),   # b_out (padded, -1e30)
        ],
        out_specs=pl.BlockSpec(memory_space=pltpu.MemorySpace.VMEM),
    )(jnp.asarray(input_words, jnp.int32), emb_proj, whh_p, wout_p, bout_p)

    return out[:, :T]


def reference_forward(input_words, emb_w, w_ih, w_hh, b_ih, b_hh, w_out, b_out):
    """Pure-JAX reference matching PyTorch LSTM semantics."""
    embeds = jnp.take(emb_w, input_words, axis=0)
    H = w_hh.shape[1]

    def step(carry, x_t):
        h, c = carry
        gates = x_t @ w_ih.T + h @ w_hh.T + b_ih + b_hh
        i = jax.nn.sigmoid(gates[0 * H:1 * H])
        f = jax.nn.sigmoid(gates[1 * H:2 * H])
        g = jnp.tanh(gates[2 * H:3 * H])
        o = jax.nn.sigmoid(gates[3 * H:4 * H])
        c = f * c + i * g
        h = o * jnp.tanh(c)
        return (h, c), h

    (_, _), hs = lax.scan(step, (jnp.zeros(H), jnp.zeros(H)), embeds)
    tag_space = hs @ w_out.T + b_out
    return jax.nn.log_softmax(tag_space, axis=1)


if __name__ == "__main__":
    # parameter = {'vocab_size': 50, 'embedding_dim': 32, 'hidden_dim': 32,
    #              'tagset_size': 16, 'lower': False}
    vocab_size, embedding_dim, hidden_dim, tagset_size = 50, 32, 32, 16
    seq_len = 8

    key = jax.random.PRNGKey(0)
    ks = jax.random.split(key, 8)
    scale = 1.0 / jnp.sqrt(hidden_dim)

    emb_w = jax.random.normal(ks[0], (vocab_size, embedding_dim), jnp.float32)
    w_ih = jax.random.uniform(ks[1], (4 * hidden_dim, embedding_dim), jnp.float32, -scale, scale)
    w_hh = jax.random.uniform(ks[2], (4 * hidden_dim, hidden_dim), jnp.float32, -scale, scale)
    b_ih = jax.random.uniform(ks[3], (4 * hidden_dim,), jnp.float32, -scale, scale)
    b_hh = jax.random.uniform(ks[4], (4 * hidden_dim,), jnp.float32, -scale, scale)
    w_out = jax.random.uniform(ks[5], (tagset_size, hidden_dim), jnp.float32, -scale, scale)
    b_out = jax.random.uniform(ks[6], (tagset_size,), jnp.float32, -scale, scale)

    input_words = jax.random.randint(ks[7], (seq_len,), 0, vocab_size)

    tag_scores = lstm_tagger_forward(input_words, emb_w, w_ih, w_hh,
                                     b_ih, b_hh, w_out, b_out)
    tag_scores = jax.block_until_ready(tag_scores)

    ref = reference_forward(input_words, emb_w, w_ih, w_hh, b_ih, b_hh, w_out, b_out)
    assert tag_scores.shape == (seq_len, tagset_size)
    assert jnp.allclose(tag_scores, ref, atol=1e-4, rtol=1e-4)

    print("KERNEL_OK")
</pallas_src>

<mosaic_0001>
module attributes {stable_mosaic.version = 11 : i64} {
  func.func @lstm_tagger_kernel(%arg0: memref<8xi32, #tpu.memory_space<smem>>, %arg1: memref<50x512xf32, #tpu.memory_space<vmem>>, %arg2: memref<128x512xf32, #tpu.memory_space<vmem>>, %arg3: memref<128x128xf32, #tpu.memory_space<vmem>>, %arg4: memref<1x128xf32, #tpu.memory_space<vmem>>, %arg5: memref<8x128xf32, #tpu.memory_space<vmem>>) attributes {dimension_semantics = [], scalar_prefetch = 0 : i64, scratch_operands = 0 : i64, tpu.core_type = #tpu.core_type<tc>} {
    %c0 = arith.constant 0 : index
    %0 = memref.load %arg0[%c0] : memref<8xi32, #tpu.memory_space<smem>>
    %1 = arith.index_cast %0 : i32 to index
    %c0_0 = arith.constant 0 : index
    %2 = vector.load %arg1[%1, %c0_0] : memref<50x512xf32, #tpu.memory_space<vmem>>, vector<1x512xf32>
    %c1 = arith.constant 1 : index
    %3 = memref.load %arg0[%c1] : memref<8xi32, #tpu.memory_space<smem>>
    %4 = arith.index_cast %3 : i32 to index
    %c0_1 = arith.constant 0 : index
    %5 = vector.load %arg1[%4, %c0_1] : memref<50x512xf32, #tpu.memory_space<vmem>>, vector<1x512xf32>
    %c2 = arith.constant 2 : index
    %6 = memref.load %arg0[%c2] : memref<8xi32, #tpu.memory_space<smem>>
    %7 = arith.index_cast %6 : i32 to index
    %c0_2 = arith.constant 0 : index
    %8 = vector.load %arg1[%7, %c0_2] : memref<50x512xf32, #tpu.memory_space<vmem>>, vector<1x512xf32>
    %c3 = arith.constant 3 : index
    %9 = memref.load %arg0[%c3] : memref<8xi32, #tpu.memory_space<smem>>
    %10 = arith.index_cast %9 : i32 to index
    %c0_3 = arith.constant 0 : index
    %11 = vector.load %arg1[%10, %c0_3] : memref<50x512xf32, #tpu.memory_space<vmem>>, vector<1x512xf32>
    %c4 = arith.constant 4 : index
    %12 = memref.load %arg0[%c4] : memref<8xi32, #tpu.memory_space<smem>>
    %13 = arith.index_cast %12 : i32 to index
    %c0_4 = arith.constant 0 : index
    %14 = vector.load %arg1[%13, %c0_4] : memref<50x512xf32, #tpu.memory_space<vmem>>, vector<1x512xf32>
    %c5 = arith.constant 5 : index
    %15 = memref.load %arg0[%c5] : memref<8xi32, #tpu.memory_space<smem>>
    %16 = arith.index_cast %15 : i32 to index
    %c0_5 = arith.constant 0 : index
    %17 = vector.load %arg1[%16, %c0_5] : memref<50x512xf32, #tpu.memory_space<vmem>>, vector<1x512xf32>
    %c6 = arith.constant 6 : index
    %18 = memref.load %arg0[%c6] : memref<8xi32, #tpu.memory_space<smem>>
    %19 = arith.index_cast %18 : i32 to index
    %c0_6 = arith.constant 0 : index
    %20 = vector.load %arg1[%19, %c0_6] : memref<50x512xf32, #tpu.memory_space<vmem>>, vector<1x512xf32>
    %c7 = arith.constant 7 : index
    %21 = memref.load %arg0[%c7] : memref<8xi32, #tpu.memory_space<smem>>
    %22 = arith.index_cast %21 : i32 to index
    %c0_7 = arith.constant 0 : index
    %23 = vector.load %arg1[%22, %c0_7] : memref<50x512xf32, #tpu.memory_space<vmem>>, vector<1x512xf32>
    %cst = arith.constant 0.000000e+00 : f32
    %24 = vector.broadcast %cst : f32 to vector<1x128xf32>
    %cst_8 = arith.constant 0.000000e+00 : f32
    %25 = vector.broadcast %cst_8 : f32 to vector<1x128xf32>
    %c0_9 = arith.constant 0 : index
    %c0_10 = arith.constant 0 : index
    %26 = vector.load %arg2[%c0_9, %c0_10] : memref<128x512xf32, #tpu.memory_space<vmem>>, vector<128x512xf32>
    %cst_11 = arith.constant dense<0.000000e+00> : vector<1x512xf32>
    %27 = tpu.matmul %24, %26, %cst_11 {dimension_numbers = #tpu.dot_dimension_numbers<[1], [0], [0], [1], [0, 0, 1, 1], [], []>} : vector<1x128xf32>, vector<128x512xf32>, vector<1x512xf32> -> vector<1x512xf32>
    %28 = arith.addf %2, %27 : vector<1x512xf32>
    %29 = arith.negf %28 : vector<1x512xf32>
    %30 = math.exp %29 : vector<1x512xf32>
    %cst_12 = arith.constant 1.000000e+00 : f32
    %31 = vector.broadcast %cst_12 : f32 to vector<1x512xf32>
    %32 = arith.addf %31, %30 : vector<1x512xf32>
    %33 = arith.divf %31, %32 : vector<1x512xf32>
    %34 = vector.extract_strided_slice %33 {offsets = [0, 0], sizes = [1, 128], strides = [1, 1]} : vector<1x512xf32> to vector<1x128xf32>
    %35 = vector.extract_strided_slice %33 {offsets = [0, 128], sizes = [1, 128], strides = [1, 1]} : vector<1x512xf32> to vector<1x128xf32>
    %36 = vector.extract_strided_slice %33 {offsets = [0, 384], sizes = [1, 128], strides = [1, 1]} : vector<1x512xf32> to vector<1x128xf32>
    %37 = vector.extract_strided_slice %28 {offsets = [0, 256], sizes = [1, 128], strides = [1, 1]} : vector<1x512xf32> to vector<1x128xf32>
    %38 = math.tanh %37 : vector<1x128xf32>
    %39 = arith.mulf %35, %25 : vector<1x128xf32>
    %40 = arith.mulf %34, %38 : vector<1x128xf32>
    %41 = arith.addf %39, %40 : vector<1x128xf32>
    %42 = math.tanh %41 : vector<1x128xf32>
    %43 = arith.mulf %36, %42 : vector<1x128xf32>
    %c0_13 = arith.constant 0 : index
    %c0_14 = arith.constant 0 : index
    %44 = vector.load %arg2[%c0_13, %c0_14] : memref<128x512xf32, #tpu.memory_space<vmem>>, vector<128x512xf32>
    %cst_15 = arith.constant dense<0.000000e+00> : vector<1x512xf32>
    %45 = tpu.matmul %43, %44, %cst_15 {dimension_numbers = #tpu.dot_dimension_numbers<[1], [0], [0], [1], [0, 0, 1, 1], [], []>} : vector<1x128xf32>, vector<128x512xf32>, vector<1x512xf32> -> vector<1x512xf32>
    %46 = arith.addf %5, %45 : vector<1x512xf32>
    %47 = arith.negf %46 : vector<1x512xf32>
    %48 = math.exp %47 : vector<1x512xf32>
    %cst_16 = arith.constant 1.000000e+00 : f32
    %49 = vector.broadcast %cst_16 : f32 to vector<1x512xf32>
    %50 = arith.addf %49, %48 : vector<1x512xf32>
    %51 = arith.divf %49, %50 : vector<1x512xf32>
    %52 = vector.extract_strided_slice %51 {offsets = [0, 0], sizes = [1, 128], strides = [1, 1]} : vector<1x512xf32> to vector<1x128xf32>
    %53 = vector.extract_strided_slice %51 {offsets = [0, 128], sizes = [1, 128], strides = [1, 1]} : vector<1x512xf32> to vector<1x128xf32>
    %54 = vector.extract_strided_slice %51 {offsets = [0, 384], sizes = [1, 128], strides = [1, 1]} : vector<1x512xf32> to vector<1x128xf32>
    %55 = vector.extract_strided_slice %46 {offsets = [0, 256], sizes = [1, 128], strides = [1, 1]} : vector<1x512xf32> to vector<1x128xf32>
    %56 = math.tanh %55 : vector<1x128xf32>
    %57 = arith.mulf %53, %41 : vector<1x128xf32>
    %58 = arith.mulf %52, %56 : vector<1x128xf32>
    %59 = arith.addf %57, %58 : vector<1x128xf32>
    %60 = math.tanh %59 : vector<1x128xf32>
    %61 = arith.mulf %54, %60 : vector<1x128xf32>
    %c0_17 = arith.constant 0 : index
    %c0_18 = arith.constant 0 : index
    %62 = vector.load %arg2[%c0_17, %c0_18] : memref<128x512xf32, #tpu.memory_space<vmem>>, vector<128x512xf32>
    %cst_19 = arith.constant dense<0.000000e+00> : vector<1x512xf32>
    %63 = tpu.matmul %61, %62, %cst_19 {dimension_numbers = #tpu.dot_dimension_numbers<[1], [0], [0], [1], [0, 0, 1, 1], [], []>} : vector<1x128xf32>, vector<128x512xf32>, vector<1x512xf32> -> vector<1x512xf32>
    %64 = arith.addf %8, %63 : vector<1x512xf32>
    %65 = arith.negf %64 : vector<1x512xf32>
    %66 = math.exp %65 : vector<1x512xf32>
    %cst_20 = arith.constant 1.000000e+00 : f32
    %67 = vector.broadcast %cst_20 : f32 to vector<1x512xf32>
    %68 = arith.addf %67, %66 : vector<1x512xf32>
    %69 = arith.divf %67, %68 : vector<1x512xf32>
    %70 = vector.extract_strided_slice %69 {offsets = [0, 0], sizes = [1, 128], strides = [1, 1]} : vector<1x512xf32> to vector<1x128xf32>
    %71 = vector.extract_strided_slice %69 {offsets = [0, 128], sizes = [1, 128], strides = [1, 1]} : vector<1x512xf32> to vector<1x128xf32>
    %72 = vector.extract_strided_slice %69 {offsets = [0, 384], sizes = [1, 128], strides = [1, 1]} : vector<1x512xf32> to vector<1x128xf32>
    %73 = vector.extract_strided_slice %64 {offsets = [0, 256], sizes = [1, 128], strides = [1, 1]} : vector<1x512xf32> to vector<1x128xf32>
    %74 = math.tanh %73 : vector<1x128xf32>
    %75 = arith.mulf %71, %59 : vector<1x128xf32>
    %76 = arith.mulf %70, %74 : vector<1x128xf32>
    %77 = arith.addf %75, %76 : vector<1x128xf32>
    %78 = math.tanh %77 : vector<1x128xf32>
    %79 = arith.mulf %72, %78 : vector<1x128xf32>
    %c0_21 = arith.constant 0 : index
    %c0_22 = arith.constant 0 : index
    %80 = vector.load %arg2[%c0_21, %c0_22] : memref<128x512xf32, #tpu.memory_space<vmem>>, vector<128x512xf32>
    %cst_23 = arith.constant dense<0.000000e+00> : vector<1x512xf32>
    %81 = tpu.matmul %79, %80, %cst_23 {dimension_numbers = #tpu.dot_dimension_numbers<[1], [0], [0], [1], [0, 0, 1, 1], [], []>} : vector<1x128xf32>, vector<128x512xf32>, vector<1x512xf32> -> vector<1x512xf32>
    %82 = arith.addf %11, %81 : vector<1x512xf32>
    %83 = arith.negf %82 : vector<1x512xf32>
    %84 = math.exp %83 : vector<1x512xf32>
    %cst_24 = arith.constant 1.000000e+00 : f32
    %85 = vector.broadcast %cst_24 : f32 to vector<1x512xf32>
    %86 = arith.addf %85, %84 : vector<1x512xf32>
    %87 = arith.divf %85, %86 : vector<1x512xf32>
    %88 = vector.extract_strided_slice %87 {offsets = [0, 0], sizes = [1, 128], strides = [1, 1]} : vector<1x512xf32> to vector<1x128xf32>
    %89 = vector.extract_strided_slice %87 {offsets = [0, 128], sizes = [1, 128], strides = [1, 1]} : vector<1x512xf32> to vector<1x128xf32>
    %90 = vector.extract_strided_slice %87 {offsets = [0, 384], sizes = [1, 128], strides = [1, 1]} : vector<1x512xf32> to vector<1x128xf32>
    %91 = vector.extract_strided_slice %82 {offsets = [0, 256], sizes = [1, 128], strides = [1, 1]} : vector<1x512xf32> to vector<1x128xf32>
    %92 = math.tanh %91 : vector<1x128xf32>
    %93 = arith.mulf %89, %77 : vector<1x128xf32>
    %94 = arith.mulf %88, %92 : vector<1x128xf32>
    %95 = arith.addf %93, %94 : vector<1x128xf32>
    %96 = math.tanh %95 : vector<1x128xf32>
    %97 = arith.mulf %90, %96 : vector<1x128xf32>
    %c0_25 = arith.constant 0 : index
    %c0_26 = arith.constant 0 : index
    %98 = vector.load %arg2[%c0_25, %c0_26] : memref<128x512xf32, #tpu.memory_space<vmem>>, vector<128x512xf32>
    %cst_27 = arith.constant dense<0.000000e+00> : vector<1x512xf32>
    %99 = tpu.matmul %97, %98, %cst_27 {dimension_numbers = #tpu.dot_dimension_numbers<[1], [0], [0], [1], [0, 0, 1, 1], [], []>} : vector<1x128xf32>, vector<128x512xf32>, vector<1x512xf32> -> vector<1x512xf32>
    %100 = arith.addf %14, %99 : vector<1x512xf32>
    %101 = arith.negf %100 : vector<1x512xf32>
    %102 = math.exp %101 : vector<1x512xf32>
    %cst_28 = arith.constant 1.000000e+00 : f32
    %103 = vector.broadcast %cst_28 : f32 to vector<1x512xf32>
    %104 = arith.addf %103, %102 : vector<1x512xf32>
    %105 = arith.divf %103, %104 : vector<1x512xf32>
    %106 = vector.extract_strided_slice %105 {offsets = [0, 0], sizes = [1, 128], strides = [1, 1]} : vector<1x512xf32> to vector<1x128xf32>
    %107 = vector.extract_strided_slice %105 {offsets = [0, 128], sizes = [1, 128], strides = [1, 1]} : vector<1x512xf32> to vector<1x128xf32>
    %108 = vector.extract_strided_slice %105 {offsets = [0, 384], sizes = [1, 128], strides = [1, 1]} : vector<1x512xf32> to vector<1x128xf32>
    %109 = vector.extract_strided_slice %100 {offsets = [0, 256], sizes = [1, 128], strides = [1, 1]} : vector<1x512xf32> to vector<1x128xf32>
    %110 = math.tanh %109 : vector<1x128xf32>
    %111 = arith.mulf %107, %95 : vector<1x128xf32>
    %112 = arith.mulf %106, %110 : vector<1x128xf32>
    %113 = arith.addf %111, %112 : vector<1x128xf32>
    %114 = math.tanh %113 : vector<1x128xf32>
    %115 = arith.mulf %108, %114 : vector<1x128xf32>
    %c0_29 = arith.constant 0 : index
    %c0_30 = arith.constant 0 : index
    %116 = vector.load %arg2[%c0_29, %c0_30] : memref<128x512xf32, #tpu.memory_space<vmem>>, vector<128x512xf32>
    %cst_31 = arith.constant dense<0.000000e+00> : vector<1x512xf32>
    %117 = tpu.matmul %115, %116, %cst_31 {dimension_numbers = #tpu.dot_dimension_numbers<[1], [0], [0], [1], [0, 0, 1, 1], [], []>} : vector<1x128xf32>, vector<128x512xf32>, vector<1x512xf32> -> vector<1x512xf32>
    %118 = arith.addf %17, %117 : vector<1x512xf32>
    %119 = arith.negf %118 : vector<1x512xf32>
    %120 = math.exp %119 : vector<1x512xf32>
    %cst_32 = arith.constant 1.000000e+00 : f32
    %121 = vector.broadcast %cst_32 : f32 to vector<1x512xf32>
    %122 = arith.addf %121, %120 : vector<1x512xf32>
    %123 = arith.divf %121, %122 : vector<1x512xf32>
    %124 = vector.extract_strided_slice %123 {offsets = [0, 0], sizes = [1, 128], strides = [1, 1]} : vector<1x512xf32> to vector<1x128xf32>
    %125 = vector.extract_strided_slice %123 {offsets = [0, 128], sizes = [1, 128], strides = [1, 1]} : vector<1x512xf32> to vector<1x128xf32>
    %126 = vector.extract_strided_slice %123 {offsets = [0, 384], sizes = [1, 128], strides = [1, 1]} : vector<1x512xf32> to vector<1x128xf32>
    %127 = vector.extract_strided_slice %118 {offsets = [0, 256], sizes = [1, 128], strides = [1, 1]} : vector<1x512xf32> to vector<1x128xf32>
    %128 = math.tanh %127 : vector<1x128xf32>
    %129 = arith.mulf %125, %113 : vector<1x128xf32>
    %130 = arith.mulf %124, %128 : vector<1x128xf32>
    %131 = arith.addf %129, %130 : vector<1x128xf32>
    %132 = math.tanh %131 : vector<1x128xf32>
    %133 = arith.mulf %126, %132 : vector<1x128xf32>
    %c0_33 = arith.constant 0 : index
    %c0_34 = arith.constant 0 : index
    %134 = vector.load %arg2[%c0_33, %c0_34] : memref<128x512xf32, #tpu.memory_space<vmem>>, vector<128x512xf32>
    %cst_35 = arith.constant dense<0.000000e+00> : vector<1x512xf32>
    %135 = tpu.matmul %133, %134, %cst_35 {dimension_numbers = #tpu.dot_dimension_numbers<[1], [0], [0], [1], [0, 0, 1, 1], [], []>} : vector<1x128xf32>, vector<128x512xf32>, vector<1x512xf32> -> vector<1x512xf32>
    %136 = arith.addf %20, %135 : vector<1x512xf32>
    %137 = arith.negf %136 : vector<1x512xf32>
    %138 = math.exp %137 : vector<1x512xf32>
    %cst_36 = arith.constant 1.000000e+00 : f32
    %139 = vector.broadcast %cst_36 : f32 to vector<1x512xf32>
    %140 = arith.addf %139, %138 : vector<1x512xf32>
    %141 = arith.divf %139, %140 : vector<1x512xf32>
    %142 = vector.extract_strided_slice %141 {offsets = [0, 0], sizes = [1, 128], strides = [1, 1]} : vector<1x512xf32> to vector<1x128xf32>
    %143 = vector.extract_strided_slice %141 {offsets = [0, 128], sizes = [1, 128], strides = [1, 1]} : vector<1x512xf32> to vector<1x128xf32>
    %144 = vector.extract_strided_slice %141 {offsets = [0, 384], sizes = [1, 128], strides = [1, 1]} : vector<1x512xf32> to vector<1x128xf32>
    %145 = vector.extract_strided_slice %136 {offsets = [0, 256], sizes = [1, 128], strides = [1, 1]} : vector<1x512xf32> to vector<1x128xf32>
    %146 = math.tanh %145 : vector<1x128xf32>
    %147 = arith.mulf %143, %131 : vector<1x128xf32>
    %148 = arith.mulf %142, %146 : vector<1x128xf32>
    %149 = arith.addf %147, %148 : vector<1x128xf32>
    %150 = math.tanh %149 : vector<1x128xf32>
    %151 = arith.mulf %144, %150 : vector<1x128xf32>
    %c0_37 = arith.constant 0 : index
    %c0_38 = arith.constant 0 : index
    %152 = vector.load %arg2[%c0_37, %c0_38] : memref<128x512xf32, #tpu.memory_space<vmem>>, vector<128x512xf32>
    %cst_39 = arith.constant dense<0.000000e+00> : vector<1x512xf32>
    %153 = tpu.matmul %151, %152, %cst_39 {dimension_numbers = #tpu.dot_dimension_numbers<[1], [0], [0], [1], [0, 0, 1, 1], [], []>} : vector<1x128xf32>, vector<128x512xf32>, vector<1x512xf32> -> vector<1x512xf32>
    %154 = arith.addf %23, %153 : vector<1x512xf32>
    %155 = arith.negf %154 : vector<1x512xf32>
    %156 = math.exp %155 : vector<1x512xf32>
    %cst_40 = arith.constant 1.000000e+00 : f32
    %157 = vector.broadcast %cst_40 : f32 to vector<1x512xf32>
    %158 = arith.addf %157, %156 : vector<1x512xf32>
    %159 = arith.divf %157, %158 : vector<1x512xf32>
    %160 = vector.extract_strided_slice %159 {offsets = [0, 0], sizes = [1, 128], strides = [1, 1]} : vector<1x512xf32> to vector<1x128xf32>
    %161 = vector.extract_strided_slice %159 {offsets = [0, 128], sizes = [1, 128], strides = [1, 1]} : vector<1x512xf32> to vector<1x128xf32>
    %162 = vector.extract_strided_slice %159 {offsets = [0, 384], sizes = [1, 128], strides = [1, 1]} : vector<1x512xf32> to vector<1x128xf32>
    %163 = vector.extract_strided_slice %154 {offsets = [0, 256], sizes = [1, 128], strides = [1, 1]} : vector<1x512xf32> to vector<1x128xf32>
    %164 = math.tanh %163 : vector<1x128xf32>
    %165 = arith.mulf %161, %149 : vector<1x128xf32>
    %166 = arith.mulf %160, %164 : vector<1x128xf32>
    %167 = arith.addf %165, %166 : vector<1x128xf32>
    %168 = math.tanh %167 : vector<1x128xf32>
    %169 = arith.mulf %162, %168 : vector<1x128xf32>
    %170 = tpu.concatenate %43, %61, %79, %97, %115, %133, %151, %169 in 0 : vector<1x128xf32>, vector<1x128xf32>, vector<1x128xf32>, vector<1x128xf32>, vector<1x128xf32>, vector<1x128xf32>, vector<1x128xf32>, vector<1x128xf32> -> vector<8x128xf32>
    %c0_41 = arith.constant 0 : index
    %c0_42 = arith.constant 0 : index
    %171 = vector.load %arg3[%c0_41, %c0_42] : memref<128x128xf32, #tpu.memory_space<vmem>>, vector<128x128xf32>
    %cst_43 = arith.constant dense<0.000000e+00> : vector<8x128xf32>
    %172 = tpu.matmul %170, %171, %cst_43 {dimension_numbers = #tpu.dot_dimension_numbers<[1], [0], [0], [1], [0, 0, 1, 1], [], []>} : vector<8x128xf32>, vector<128x128xf32>, vector<8x128xf32> -> vector<8x128xf32>
    %c0_44 = arith.constant 0 : index
    %c0_45 = arith.constant 0 : index
    %173 = vector.load %arg4[%c0_44, %c0_45] : memref<1x128xf32, #tpu.memory_space<vmem>>, vector<1x128xf32>
    %174 = vector.broadcast %173 : vector<1x128xf32> to vector<8x128xf32>
    %175 = arith.addf %172, %174 : vector<8x128xf32>
    %cst_46 = arith.constant dense<0xFF800000> : vector<8xf32>
    %176 = vector.multi_reduction <maximumf>, %175, %cst_46 [1] : vector<8x128xf32> to vector<8xf32>
    %177 = vector.shape_cast %176 : vector<8xf32> to vector<8x1xf32>
    %178 = vector.broadcast %177 : vector<8x1xf32> to vector<8x128xf32>
    %179 = arith.subf %175, %178 : vector<8x128xf32>
    %180 = math.exp %179 : vector<8x128xf32>
    %cst_47 = arith.constant dense<0.000000e+00> : vector<8xf32>
    %181 = vector.multi_reduction <add>, %180, %cst_47 [1] : vector<8x128xf32> to vector<8xf32>
    %182 = vector.shape_cast %181 : vector<8xf32> to vector<8x1xf32>
    %183 = math.log %182 : vector<8x1xf32>
    %184 = vector.broadcast %183 : vector<8x1xf32> to vector<8x128xf32>
    %185 = arith.subf %179, %184 : vector<8x128xf32>
    %c0_48 = arith.constant 0 : index
    %c0_49 = arith.constant 0 : index
    %186 = vector.load %arg5[%c0_48, %c0_49] : memref<8x128xf32, #tpu.memory_space<vmem>>, vector<8x128xf32>
    tpu.vector_store %arg5[%c0_48, %c0_49], %185 {strides = array<i32>} : memref<8x128xf32, #tpu.memory_space<vmem>>, vector<8x128xf32>,
    return
  }
}

</mosaic_0001>

<bundles_post_ra>
// kernel: tpu_custom_call.1
= control target key start
LH: loop header
LB: loop body
LE: loop exit
PB: predicated region body
PF: predicated region fallthrough
CT: control target
= control target key end

     0   :  { %10 = vsyncpa [#allocation5], 0  ;;  %s3306_s0 = inlined_call_operand.hbm [shape: s32[8], index: 0, kind: input, shape index: {}]   ;;  %s3307_s1 = inlined_call_operand.hbm [shape: f32[50,512], index: 1, kind: input, shape index: {}]   ;;  %s3308_s2 = inlined_call_operand.hbm [shape: f32[128,512], index: 2, kind: input, shape index: {}]   ;;  %s3309_s3 = inlined_call_operand.hbm [shape: f32[128,128], index: 3, kind: input, shape index: {}]   ;;  %s3310_s4 = inlined_call_operand.vmem [shape: f32[1,128], index: 4, kind: input, shape index: {}]   ;;  %s3311_s5 = inlined_call_operand.hbm [shape: f32[8,128], index: 5, kind: output, shape index: {}]  }
   0x1   :  { %11 = vsyncpa [#allocation3], 0 }
   0x2   :  { %12 = vsyncpa [#allocation8], 0 }
   0x3   :  { %13 = vsyncpa [#allocation4], 0  ;;  %s2769_s18 = smov [#allocation7]   ;;  %s2770_s20 = smov [#allocation6]  }
   0x4   :  { %s39_s19 = sshll.u32 %s2769_s18, 4  ;;  %s27_s21 = sshll.u32 %s2770_s20, 4  ;;  %s40_s19 = int_to_ptr.vmem [resolvable:$true] %s39_s19  ;;  %s28_s21 = int_to_ptr.vmem [resolvable:$true] %s27_s21 }
   0x5   :  { %s2663_s24 = scalar_lea.hbm %s3308_s2, 8192 }
   0x6   :  { %p2664_p0 = scmp.ne.s32.totalorder %s3308_s2, %s2663_s24  ;;  %p2667_p1 = scmp.lt.u32.totalorder %s2663_s24, %s3308_s2 }
   0x8   :  { %p2669_p2 = pnand %p2667_p1, %p2664_p0 }
   0xa   :  { %2672 = shalt.err (!%p2669_p2)
}
   0xb   :  { %s2673_s29 = scalar_lea.vmem %s40_s19, 8192  ;;  %p2678_p4 = scmp.lt.s32.totalorder %s40_s19, %s40_s19 }
   0xc   :  { %p2674_p3 = scmp.ne.s32.totalorder %s40_s19, %s2673_s29  ;;  %p2679_p5 = scmp.lt.s32.totalorder %s2673_s29, %s2673_s29 }
   0xe   :  { %p2680_p6 = por %p2679_p5, %p2678_p4 }
  0x10   :  { %p2681_p7 = pnand %p2680_p6, %p2674_p3 }
  0x12   :  { %2684 = shalt.err (!%p2681_p7)
}
  0x13   :  { %s2771_s30 = smov 512   ;;  %s2772_s6 = smov 32  }
  0x14   :  { %45 = dma.hbm_to_vmem [thread:$0]  %s3308_s2, 8192, %s40_s19, [#allocation8], %s2771_s30, %s2771_s30, %s2772_s6  }
  0x15   :  { %s2685_s11 = scalar_lea.hbm %s3306_s0, 16 }
  0x16   :  { %p2686_p8 = scmp.ne.s32.totalorder %s3306_s0, %s2685_s11  ;;  %p2689_p9 = scmp.lt.u32.totalorder %s2685_s11, %s3306_s0 }
  0x18   :  { %p2691_p10 = pnand %p2689_p9, %p2686_p8 }
  0x1a   :  { %2694 = shalt.err (!%p2691_p10)
}
  0x1b   :  { %s2773_s16 = smov [#allocation2]   ;;  %s2695_s20 = scalar_lea.hbm %s3307_s1, 3584 }
  0x1c   :  { %21 = dma.hbm_to_smem %s3306_s0, 16, %s2773_s16, [#allocation5]  }
  0x1d   :  { %p2696_p11 = scmp.ne.s32.totalorder %s3307_s1, %s2695_s20  ;;  %p2699_p12 = scmp.lt.u32.totalorder %s2695_s20, %s3307_s1 }
  0x1f   :  { %p2701_p13 = pnand %p2699_p12, %p2696_p11 }
  0x21   :  { %2704 = shalt.err (!%p2701_p13)
}
  0x22   :  { %s2705_s26 = scalar_lea.vmem %s28_s21, 3584  ;;  %p2710_p1 = scmp.lt.s32.totalorder %s28_s21, %s28_s21 }
  0x23   :  { %p2706_p0 = scmp.ne.s32.totalorder %s28_s21, %s2705_s26  ;;  %p2711_p2 = scmp.lt.s32.totalorder %s2705_s26, %s2705_s26 }
  0x25   :  { %p2712_p3 = por %p2711_p2, %p2710_p1 }
  0x27   :  { %p2713_p4 = pnand %p2712_p3, %p2706_p0 }
  0x29   :  { %2716 = shalt.err (!%p2713_p4)
}
  0x2a   :  { %33 = dma.hbm_to_vmem [thread:$0]  %s3307_s1, 3584, %s28_s21, [#allocation3], %s2771_s30, %s2771_s30, %s2772_s6  }
  0x2b   :  { %s2774_s28 = smov [#allocation9]   ;;  %s2717_s9 = scalar_lea.hbm %s3309_s3, 2048 }
  0x2c   :  { %s51_s29 = sshll.u32 %s2774_s28, 4  ;;  %p2718_p5 = scmp.ne.s32.totalorder %s3309_s3, %s2717_s9  ;;  %s52_s29 = int_to_ptr.vmem [resolvable:$true] %s51_s29 }
  0x2d   :  { %p2721_p6 = scmp.lt.u32.totalorder %s2717_s9, %s3309_s3 }
  0x2f   :  { %p2723_p7 = pnand %p2721_p6, %p2718_p5 }
  0x31   :  { %2726 = shalt.err (!%p2723_p7)
}
  0x32   :  { %s2727_s14 = scalar_lea.vmem %s52_s29, 2048  ;;  %p2732_p9 = scmp.lt.s32.totalorder %s52_s29, %s52_s29 }
  0x33   :  { %p2728_p8 = scmp.ne.s32.totalorder %s52_s29, %s2727_s14  ;;  %p2733_p10 = scmp.lt.s32.totalorder %s2727_s14, %s2727_s14 }
  0x35   :  { %p2734_p11 = por %p2733_p10, %p2732_p9 }
  0x37   :  { %p2735_p12 = pnand %p2734_p11, %p2728_p8 }
  0x39   :  { %2738 = shalt.err (!%p2735_p12)
}
  0x3a   :  { %s2775_s1 = smov 128   ;;  %s2776_s21 = smov 8  }
  0x3b   :  { %57 = dma.hbm_to_vmem [thread:$0]  %s3309_s3, 2048, %s52_s29, [#allocation8], %s2775_s1, %s2775_s1, %s2776_s21  }
  0x3c   :  { %2761 = dma.done.wait [#allocation5], 16  }
  0x3d   :  { %2762 = vsyncadd [#allocation5], 4294967280 }
  0x3e   :  { %2763 = dma.done.wait [#allocation3], 3584  }
  0x3f   :  { %2764 = vsyncadd [#allocation3], 4294963712 }
  0x40   :  { %2765 = dma.done.wait [#allocation8], 10240  }
  0x41   :  { %2766 = vsyncadd [#allocation8], 4294957056 }
  0x42   :  { %72 = sfence }
  0x43   :  { %v154_v0 = vld [vmem:[#allocation7 + $0x8] sm:$0xff]  ;;  %v156_v2 = vld [vmem:[#allocation7 + $0x18] sm:$0xff]  ;;  %v153_v5 = vld [vmem:[#allocation7] sm:$0xff]  ;;  %v2777_v7 = vmov 0.0   ;;  %s73_s3 = sld [smem:[#allocation2]]  ;;  %s1956_s19 = sld [smem:[#allocation2 + $0x1]] }
  0x44   :  { %v158_v1 = vld [vmem:[#allocation7 + $0x28] sm:$0xff]  ;;  %v160_v4 = vld [vmem:[#allocation7 + $0x38] sm:$0xff]  ;;  %v157_v6 = vld [vmem:[#allocation7 + $0x20] sm:$0xff]  ;;  %281 = vmatprep.mubr.f32.mxu0 %v2777_v7  ;;  %352 = vmatprep.mubr.f32.mxu1 %v2777_v7  ;;  %s1959_s26 = sld [smem:[#allocation2 + $0x2]]  ;;  %vm1795_vm0 = vcmask 1040384   ;;  %vm1797_vm1 = vcmask 1041408  }
  0x45   :  { %v2860_v3 = vpack.c.bf16 %v158_v1, %v154_v0  ;;  %v2864_v8 = vpack.c.bf16 %v160_v4, %v156_v2  ;;  %v2866_v9 = vpack.c.bf16 %v157_v6, %v153_v5  ;;  %v155_v10 = vld [vmem:[#allocation7 + $0x10] sm:$0xff]  ;;  %v162_v12 = vld [vmem:[#allocation7 + $0x48] sm:$0xff]  ;;  %v164_v15 = vld [vmem:[#allocation7 + $0x58] sm:$0xff]  ;;  %s1962_s8 = sld [smem:[#allocation2 + $0x3]]  ;;  %vm1799_vm2 = vcmask 1042432   ;;  %s1965_s14 = sld [smem:[#allocation2 + $0x4]] }
  0x46   :  { %v159_v11 = vld [vmem:[#allocation7 + $0x30] sm:$0xff]  ;;  %v166_v14 = vld [vmem:[#allocation7 + $0x68] sm:$0xff]  ;;  %v168_v16 = vld [vmem:[#allocation7 + $0x78] sm:$0xff]  ;;  %vm1801_vm3 = vcmask 1043456   ;;  %vm1803_vm4 = vcmask 1044480   ;;  %vm1805_vm5 = vcmask 1045504  }
  0x47   :  { %2047 = vmatprep.subr.bf16.mxu0 %v2860_v3  ;;  %v2869_v13 = vpack.c.bf16 %v159_v11, %v155_v10  ;;  %2079 = vmatprep.subr.bf16.mxu1 %v2864_v8  ;;  %v2873_v17 = vpack.c.bf16 %v166_v14, %v162_v12  ;;  %v2875_v18 = vpack.c.bf16 %v168_v16, %v164_v15  ;;  %v161_v19 = vld [vmem:[#allocation7 + $0x40] sm:$0xff]  ;;  %v163_v21 = vld [vmem:[#allocation7 + $0x50] sm:$0xff]  ;;  %v170_v24 = vld [vmem:[#allocation7 + $0x88] sm:$0xff]  ;;  %vm2780_vm6 = vmmov 0  }
  0x48   :  { %2049 = vmatpush1.bf16.msra.mxu0 %v2866_v9  ;;  %v165_v20 = vld [vmem:[#allocation7 + $0x60] sm:$0xff]  ;;  %v167_v23 = vld [vmem:[#allocation7 + $0x70] sm:$0xff]  ;;  %v174_v25 = vld [vmem:[#allocation7 + $0xa8] sm:$0xff]  ;;  %vm1807_vm7 = vcmask 1046528  }
  0x49   :  { %2081 = vmatpush1.bf16.msra.mxu1 %v2869_v13  ;;  %v2878_v22 = vpack.c.bf16 %v165_v20, %v161_v19  ;;  %2051 = vmatprep.subr.bf16.mxu0 %v2873_v17  ;;  %v2882_v26 = vpack.c.bf16 %v167_v23, %v163_v21  ;;  %v2884_v27 = vpack.c.bf16 %v174_v25, %v170_v24  ;;  %v172_v28 = vld [vmem:[#allocation7 + $0x98] sm:$0xff]  ;;  %v169_v30 = vld [vmem:[#allocation7 + $0x80] sm:$0xff]  ;;  %v171_v33 = vld [vmem:[#allocation7 + $0x90] sm:$0xff]  ;;  %s74_s15 = sshra.s32 %s73_s3, 3  ;;  %s77_s16 = sand.u32 7, %s73_s3 }
  0x4a   :  { %2083 = vmatprep.subr.bf16.mxu1 %v2875_v18  ;;  %v176_v29 = vld [vmem:[#allocation7 + $0xb8] sm:$0xff]  ;;  %v173_v32 = vld [vmem:[#allocation7 + $0xa0] sm:$0xff]  ;;  %v175_v34 = vld [vmem:[#allocation7 + $0xb0] sm:$0xff]  ;;  %s1986_s17 = sshll.u32 %s74_s15, 5  ;;  %s84_s20 = sshra.s32 %s1956_s19, 3 }
  0x4b   :  { %v2886_v31 = vpack.c.bf16 %v176_v29, %v172_v28  ;;  %v2889_v35 = vpack.c.bf16 %v173_v32, %v169_v30  ;;  %v178_v36 = vld [vmem:[#allocation7 + $0xc8] sm:$0xff]  ;;  %v180_v38 = vld [vmem:[#allocation7 + $0xd8] sm:$0xff]  ;;  %v2893_v39 = vpack.c.bf16 %v175_v34, %v171_v33  ;;  %v177_v42 = vld [vmem:[#allocation7 + $0xc0] sm:$0xff]  ;;  %s80_s18 = sadd.s32 %s1986_s17, %s77_s16  ;;  %s87_s22 = sand.u32 7, %s1956_s19 }
  0x4c   :  { %2053 = vmatpush1.bf16.msra.mxu0 %v2878_v22  ;;  %v182_v37 = vld [vmem:[#allocation7 + $0xe8] sm:$0xff]  ;;  %v184_v41 = vld [vmem:[#allocation7 + $0xf8] sm:$0xff]  ;;  %v181_v43 = vld [vmem:[#allocation7 + $0xe0] sm:$0xff]  ;;  %s81_s2 = scalar_lea.vmem [#allocation6], %s80_s18  ;;  %s1987_s23 = sshll.u32 %s84_s20, 5 }
  0x4d   :  { %2085 = vmatpush1.bf16.msra.mxu1 %v2882_v26  ;;  %2055 = vmatprep.subr.bf16.mxu0 %v2884_v27  ;;  %v2895_v40 = vpack.c.bf16 %v182_v37, %v178_v36  ;;  %v2898_v44 = vpack.c.bf16 %v184_v41, %v180_v38  ;;  %v179_v45 = vld [vmem:[#allocation7 + $0xd0] sm:$0xff]  ;;  %v186_v47 = vld [vmem:[#allocation7 + $0x108] sm:$0xff]  ;;  %v188_v49 = vld [vmem:[#allocation7 + $0x118] sm:$0xff]  ;;  %v2901_v51 = vpack.c.bf16 %v181_v43, %v177_v42  ;;  %s90_s24 = sadd.s32 %s1987_s23, %s87_s22  ;;  %s94_s0 = sshra.s32 %s1959_s26, 3 }
  0x4e   :  { %2087 = vmatprep.subr.bf16.mxu1 %v2886_v31  ;;  %v183_v46 = vld [vmem:[#allocation7 + $0xf0] sm:$0xff]  ;;  %v190_v48 = vld [vmem:[#allocation7 + $0x128] sm:$0xff]  ;;  %v192_v50 = vld [vmem:[#allocation7 + $0x138] sm:$0xff]  ;;  %s91_s25 = scalar_lea.vmem [#allocation6], %s90_s24  ;;  %s97_s27 = sand.u32 7, %s1959_s26 }
  0x4f   :  { %v2905_v52 = vpack.c.bf16 %v183_v46, %v179_v45  ;;  %v2907_v53 = vpack.c.bf16 %v190_v48, %v186_v47  ;;  %v185_v54 = vld [vmem:[#allocation7 + $0x100] sm:$0xff]  ;;  %v187_v56 = vld [vmem:[#allocation7 + $0x110] sm:$0xff]  ;;  %v2910_v57 = vpack.c.bf16 %v192_v50, %v188_v49  ;;  %v194_v59 = vld [vmem:[#allocation7 + $0x148] sm:$0xff]  ;;  %v2778_v48 = vmov 1966171168   ;;  %s1988_s28 = sshll.u32 %s94_s0, 5 }
  0x50   :  { %2057 = vmatpush1.bf16.msra.mxu0 %v2889_v35  ;;  %v189_v55 = vld [vmem:[#allocation7 + $0x120] sm:$0xff]  ;;  %v191_v58 = vld [vmem:[#allocation7 + $0x130] sm:$0xff]  ;;  %v198_v60 = vld [vmem:[#allocation7 + $0x168] sm:$0xff]  ;;  %v366_v49 = vunpack.c.l.s4 %v2778_v48  ;;  %v368_v50 = vlaneseq  ;;  %s100_s29 = sadd.s32 %s1988_s28, %s97_s27  ;;  %s104_s9 = sshra.s32 %s1962_s8, 3 }
  0x51   :  { %2089 = vmatpush1.bf16.msra.mxu1 %v2893_v39  ;;  %2059 = vmatprep.subr.bf16.mxu0 %v2895_v40  ;;  %v196_v61 = vld [vmem:[#allocation7 + $0x158] sm:$0xff]  ;;  %v2913_v63 = vpack.c.bf16 %v189_v55, %v185_v54  ;;  %v2917_v0 = vpack.c.bf16 %v191_v58, %v187_v56  ;;  %v2919_v1 = vpack.c.bf16 %v198_v60, %v194_v59  ;;  %v193_v2 = vld [vmem:[#allocation7 + $0x140] sm:$0xff]  ;;  %v195_v5 = vld [vmem:[#allocation7 + $0x150] sm:$0xff]  ;;  %s101_s7 = scalar_lea.vmem [#allocation6], %s100_s29  ;;  %s107_s10 = sand.u32 7, %s1962_s8 }
  0x52   :  { %2091 = vmatprep.subr.bf16.mxu1 %v2898_v44  ;;  %v200_v62 = vld [vmem:[#allocation7 + $0x178] sm:$0xff]  ;;  %v197_v4 = vld [vmem:[#allocation7 + $0x160] sm:$0xff]  ;;  %v199_v10 = vld [vmem:[#allocation7 + $0x170] sm:$0xff]  ;;  %v367_v54 = vunpack.c.0.s8 %v366_v49  ;;  %v2996_v55 = vshrl.u32 %v368_v50, 7  ;;  %s1989_s11 = sshll.u32 %s104_s9, 5  ;;  %s114_s1 = sshra.s32 %s1965_s14, 3 }
  0x53   :  { %v2922_v6 = vpack.c.bf16 %v200_v62, %v196_v61  ;;  %v202_v11 = vld [vmem:[#allocation7 + $0x188] sm:$0xff]  ;;  %v204_v14 = vld [vmem:[#allocation7 + $0x198] sm:$0xff]  ;;  %v2925_v16 = vpack.c.bf16 %v197_v4, %v193_v2  ;;  %v2929_v19 = vpack.c.bf16 %v199_v10, %v195_v5  ;;  %v201_v21 = vld [vmem:[#allocation7 + $0x180] sm:$0xff]  ;;  %s110_s12 = sadd.s32 %s1989_s11, %s107_s10  ;;  %s117_s21 = sand.u32 7, %s1965_s14 }
  0x54   :  { %2061 = vmatpush1.bf16.msra.mxu0 %v2901_v51  ;;  %v206_v12 = vld [vmem:[#allocation7 + $0x1a8] sm:$0xff]  ;;  %v208_v15 = vld [vmem:[#allocation7 + $0x1b8] sm:$0xff]  ;;  %v205_v23 = vld [vmem:[#allocation7 + $0x1a0] sm:$0xff]  ;;  %v2999_v58 = vsub.s32 %v367_v54, %v2996_v55  ;;  %s111_s13 = scalar_lea.vmem [#allocation6], %s110_s12  ;;  %s1990_s30 = sshll.u32 %s114_s1, 5 }
  0x55   :  { %2093 = vmatpush1.bf16.msra.mxu1 %v2905_v52  ;;  %2063 = vmatprep.subr.bf16.mxu0 %v2907_v53  ;;  %v2931_v20 = vpack.c.bf16 %v206_v12, %v202_v11  ;;  %v203_v24 = vld [vmem:[#allocation7 + $0x190] sm:$0xff]  ;;  %v2934_v25 = vpack.c.bf16 %v208_v15, %v204_v14  ;;  %v210_v29 = vld [vmem:[#allocation7 + $0x1c8] sm:$0xff]  ;;  %v212_v32 = vld [vmem:[#allocation7 + $0x1d8] sm:$0xff]  ;;  %v2937_v34 = vpack.c.bf16 %v205_v23, %v201_v21  ;;  %s120_s6 = sadd.s32 %s1990_s30, %s117_s21  ;;  %s1968_s15 = sld [smem:[#allocation2 + $0x5]] }
  0x56   :  { %2095 = vmatprep.subr.bf16.mxu1 %v2910_v57  ;;  %v207_v28 = vld [vmem:[#allocation7 + $0x1b0] sm:$0xff]  ;;  %v214_v30 = vld [vmem:[#allocation7 + $0x1e8] sm:$0xff]  ;;  %v216_v33 = vld [vmem:[#allocation7 + $0x1f8] sm:$0xff]  ;;  %s121_s3 = scalar_lea.vmem [#allocation6], %s120_s6  ;;  %s1971_s20 = sld [smem:[#allocation2 + $0x6]] }
  0x57   :  { %v2941_v36 = vpack.c.bf16 %v207_v28, %v203_v24  ;;  %v2943_v37 = vpack.c.bf16 %v214_v30, %v210_v29  ;;  %v209_v38 = vld [vmem:[#allocation7 + $0x1c0] sm:$0xff]  ;;  %v2946_v42 = vpack.c.bf16 %v216_v33, %v212_v32  ;;  %v211_v43 = vld [vmem:[#allocation7 + $0x1d0] sm:$0xff]  ;;  %s1974_s0 = sld [smem:[#allocation2 + $0x7]]  ;;  %s2781_s11 = smov [#allocation10]  }
  0x58   :  { %2065 = vmatpush1.bf16.msra.mxu0 %v2913_v63  ;;  %v213_v41 = vld [vmem:[#allocation7 + $0x1e0] sm:$0xff]  ;;  %v215_v45 = vld [vmem:[#allocation7 + $0x1f0] sm:$0xff]  ;;  %s1919_s12 = sshll.u32 %s2781_s11, 4  ;;  %s1920_s12 = int_to_ptr.vmem [resolvable:$true] %s1919_s12 }
  0x59   :  { %2097 = vmatpush1.bf16.msra.mxu1 %v2917_v0  ;;  %2067 = vmatprep.subr.bf16.mxu0 %v2919_v1  ;;  %v2949_v46 = vpack.c.bf16 %v213_v41, %v209_v38  ;;  %v2953_v47 = vpack.c.bf16 %v215_v45, %v211_v43  ;;  %v82_v11 = vld [vmem:[%s81_s2] ss:$8 sm:$0xf]  ;;  %p2744_p0 = scmp.lt.s32.totalorder %s1920_s12, %s1920_s12 }
  0x5a   :  { %2099 = vmatprep.subr.bf16.mxu1 %v2922_v6 }
  0x5b   :  { %s124_s16 = sshra.s32 %s1968_s15, 3  ;;  %s127_s17 = sand.u32 7, %s1968_s15 }
  0x5c   :  { %2069 = vmatpush1.bf16.msra.mxu0 %v2925_v16  ;;  %s1991_s18 = sshll.u32 %s124_s16, 5  ;;  %s134_s22 = sshra.s32 %s1971_s20, 3 }
  0x5d   :  { %2101 = vmatpush1.bf16.msra.mxu1 %v2929_v19  ;;  %2071 = vmatprep.subr.bf16.mxu0 %v2931_v20  ;;  %s130_s2 = sadd.s32 %s1991_s18, %s127_s17  ;;  %s137_s23 = sand.u32 7, %s1971_s20 }
  0x5e   :  { %2103 = vmatprep.subr.bf16.mxu1 %v2934_v25  ;;  %s131_s19 = scalar_lea.vmem [#allocation6], %s130_s2  ;;  %s1992_s24 = sshll.u32 %s134_s22, 5 }
  0x5f   :  { %s144_s27 = sshra.s32 %s1974_s0, 3  ;;  %s147_s28 = sand.u32 7, %s1974_s0 }
  0x60   :  { %2073 = vmatpush1.bf16.msra.mxu0 %v2937_v34  ;;  %s1993_s29 = sshll.u32 %s144_s27, 5 }
  0x61   :  { %2105 = vmatpush1.bf16.msra.mxu1 %v2941_v36  ;;  %2075 = vmatprep.subr.bf16.mxu0 %v2943_v37 }
  0x62   :  { %2107 = vmatprep.subr.bf16.mxu1 %v2946_v42 }
  0x64   :  { %2077 = vmatpush1.bf16.msra.mxu0 %v2949_v46 }
  0x65   :  { %2109 = vmatpush1.bf16.msra.mxu1 %v2953_v47  ;;  %2111 = vmatprep.subr.bf16.mxu0 %v2860_v3 }
  0x66   :  { %2143 = vmatprep.subr.bf16.mxu1 %v2864_v8 }
  0x67   :  { %282 = vmatmul.mubr.f32.vlgmr.msra.gmra.mrb[0].mxu0 %v2777_v7 }
  0x68   :  { %353 = vmatmul.mubr.f32.vlgmr.msra.gmra.mrb[0].mxu1 %v2777_v7  ;;  %2113 = vmatpush1.bf16.msra.mxu0 %v2866_v9 }
  0x69   :  { %2145 = vmatpush1.bf16.msra.mxu1 %v2869_v13  ;;  %2115 = vmatprep.subr.bf16.mxu0 %v2873_v17 }
  0x6a   :  { %2147 = vmatprep.subr.bf16.mxu1 %v2875_v18  ;;  %473 = vmatprep.mubr.f32.mxu0 %v2777_v7 }
  0x6b   :  { %544 = vmatprep.mubr.f32.mxu1 %v2777_v7 }
  0x6c   :  { %2117 = vmatpush1.bf16.msra.mxu0 %v2878_v22 }
  0x6d   :  { %2149 = vmatpush1.bf16.msra.mxu1 %v2882_v26  ;;  %2119 = vmatprep.subr.bf16.mxu0 %v2884_v27 }
  0x6e   :  { %2151 = vmatprep.subr.bf16.mxu1 %v2886_v31 }
  0x70   :  { %2121 = vmatpush1.bf16.msra.mxu0 %v2889_v35 }
  0x71   :  { %2153 = vmatpush1.bf16.msra.mxu1 %v2893_v39  ;;  %2123 = vmatprep.subr.bf16.mxu0 %v2895_v40 }
  0x72   :  { %2155 = vmatprep.subr.bf16.mxu1 %v2898_v44 }
  0x74   :  { %2125 = vmatpush1.bf16.msra.mxu0 %v2901_v51 }
  0x75   :  { %2157 = vmatpush1.bf16.msra.mxu1 %v2905_v52  ;;  %2127 = vmatprep.subr.bf16.mxu0 %v2907_v53 }
  0x76   :  { %2159 = vmatprep.subr.bf16.mxu1 %v2910_v57 }
  0x78   :  { %2129 = vmatpush1.bf16.msra.mxu0 %v2913_v63 }
  0x79   :  { %2161 = vmatpush1.bf16.msra.mxu1 %v2917_v0  ;;  %2131 = vmatprep.subr.bf16.mxu0 %v2919_v1 }
  0x7a   :  { %2163 = vmatprep.subr.bf16.mxu1 %v2922_v6 }
  0x7c   :  { %2133 = vmatpush1.bf16.msra.mxu0 %v2925_v16 }
  0x7d   :  { %2165 = vmatpush1.bf16.msra.mxu1 %v2929_v19  ;;  %2135 = vmatprep.subr.bf16.mxu0 %v2931_v20 }
  0x7e   :  { %2167 = vmatprep.subr.bf16.mxu1 %v2934_v25 }
  0x80   :  { %2137 = vmatpush1.bf16.msra.mxu0 %v2937_v34 }
  0x81   :  { %2169 = vmatpush1.bf16.msra.mxu1 %v2941_v36  ;;  %2139 = vmatprep.subr.bf16.mxu0 %v2943_v37 }
  0x82   :  { %2171 = vmatprep.subr.bf16.mxu1 %v2946_v42 }
  0x84   :  { %2141 = vmatpush1.bf16.msra.mxu0 %v2949_v46 }
  0x85   :  { %2173 = vmatpush1.bf16.msra.mxu1 %v2953_v47  ;;  %2175 = vmatprep.subr.bf16.mxu0 %v2860_v3 }
  0x86   :  { %2207 = vmatprep.subr.bf16.mxu1 %v2864_v8 }
 0x13a   :  { %v283_v56 = vpop.f32.mrb[0].mxu0 }
 0x13b   :  { %v354_v59 = vpop.f32.mrb[0].mxu1  ;;  %v285_v60 = vpop.f32.mrb[1].mxu0 }
 0x13c   :  { %v363_v61 = vcombine.low %v283_v56, %v285_v60  ;;  %v356_v62 = vpop.f32.mrb[1].mxu1 }
 0x13d   :  { %v364_v2 = vcombine.low %v354_v59, %v356_v62 }
 0x13e   :  { %v371_v4 = vrot.slane %v363_v61, %v2999_v58 }
 0x13f   :  { %v378_v5 = vrot.slane %v364_v2, %v2999_v58  ;;  %v92_v2 = vld [vmem:[%s91_s25] ss:$8 sm:$0xf]  ;;  %s140_s25 = sadd.s32 %s1992_s24, %s137_s23 }
 0x140   :  { %s141_s26 = scalar_lea.vmem [#allocation6], %s140_s25 }
 0x141   :  { %v379_v10 = vcombine.low %v371_v4, %v378_v5 }
 0x143   :  { %v386_v12 = vrot.slane %v379_v10, %v2999_v58 }
 0x145   :  { %v388_v14 = vadd.f32 %v386_v12, %v82_v11 }
 0x147   :  { %v1977_v15 = vmul.f32 -1.442695, %v388_v14  ;;  %v396_v24 = vrot.slane %v388_v14, 2 }
 0x149   :  { %2595 = vpow2.f32 %v1977_v15 }
 0x153   :  { %v2596_v21 = vpop.eup %2595 }
 0x154   :  { %v392_v23 = vadd.f32 1.0, %v2596_v21 }
 0x156   :  { %2597 = vrcp.f32 %v392_v23 }
 0x157   :  { %2599 = vtanh.f32 %v396_v24 }
 0x160   :  { %v2598_v28 = vpop.eup %2597 }
 0x161   :  { %v400_v29 = vrot.slane %v2598_v28, 1  ;;  %v2600_v30 = vpop.eup %2599  ;;  %v406_v41 = vrot.slane %v2598_v28, 3 }
 0x162   :  { %v403_v32 = vmul.f32 %v2600_v30, %v2598_v28 }
 0x163   :  { %v402_v33 = vmul.f32 0.0, %v400_v29 }
 0x165   :  { %v3004_v38 = vadd.f32 %v403_v32, %v402_v33 }
 0x167   :  { %2601 = vtanh.f32 %v3004_v38 }
 0x171   :  { %v2602_v43 = vpop.eup %2601 }
 0x172   :  { %v3007_v45 = vmul.f32 %v2602_v43, %v406_v41 }
 0x174   :  { %474 = vmatmul.mubr.f32.vlgmr.msra.gmra.mrb[2].mxu0 %v3007_v45  ;;  %545 = vmatmul.mubr.f32.vlgmr.msra.gmra.mrb[2].mxu1 %v3007_v45 }
 0x175   :  { %2177 = vmatpush1.bf16.msra.mxu0 %v2866_v9  ;;  %2209 = vmatpush1.bf16.msra.mxu1 %v2869_v13 }
 0x176   :  { %2179 = vmatprep.subr.bf16.mxu0 %v2873_v17  ;;  %2211 = vmatprep.subr.bf16.mxu1 %v2875_v18 }
 0x177   :  { %665 = vmatprep.mubr.f32.mxu0 %v2777_v7  ;;  %736 = vmatprep.mubr.f32.mxu1 %v2777_v7 }
 0x179   :  { %2181 = vmatpush1.bf16.msra.mxu0 %v2878_v22  ;;  %2213 = vmatpush1.bf16.msra.mxu1 %v2882_v26 }
 0x17a   :  { %2183 = vmatprep.subr.bf16.mxu0 %v2884_v27  ;;  %2215 = vmatprep.subr.bf16.mxu1 %v2886_v31 }
 0x17d   :  { %2185 = vmatpush1.bf16.msra.mxu0 %v2889_v35  ;;  %2217 = vmatpush1.bf16.msra.mxu1 %v2893_v39 }
 0x17e   :  { %2187 = vmatprep.subr.bf16.mxu0 %v2895_v40  ;;  %2219 = vmatprep.subr.bf16.mxu1 %v2898_v44 }
 0x181   :  { %2189 = vmatpush1.bf16.msra.mxu0 %v2901_v51  ;;  %2221 = vmatpush1.bf16.msra.mxu1 %v2905_v52 }
 0x182   :  { %2191 = vmatprep.subr.bf16.mxu0 %v2907_v53  ;;  %2223 = vmatprep.subr.bf16.mxu1 %v2910_v57 }
 0x185   :  { %2193 = vmatpush1.bf16.msra.mxu0 %v2913_v63  ;;  %2225 = vmatpush1.bf16.msra.mxu1 %v2917_v0 }
 0x186   :  { %2195 = vmatprep.subr.bf16.mxu0 %v2919_v1  ;;  %2227 = vmatprep.subr.bf16.mxu1 %v2922_v6 }
 0x189   :  { %2197 = vmatpush1.bf16.msra.mxu0 %v2925_v16  ;;  %2229 = vmatpush1.bf16.msra.mxu1 %v2929_v19 }
 0x18a   :  { %2199 = vmatprep.subr.bf16.mxu0 %v2931_v20  ;;  %2231 = vmatprep.subr.bf16.mxu1 %v2934_v25 }
 0x18d   :  { %2201 = vmatpush1.bf16.msra.mxu0 %v2937_v34  ;;  %2233 = vmatpush1.bf16.msra.mxu1 %v2941_v36 }
 0x18e   :  { %2203 = vmatprep.subr.bf16.mxu0 %v2943_v37  ;;  %2235 = vmatprep.subr.bf16.mxu1 %v2946_v42 }
 0x191   :  { %2205 = vmatpush1.bf16.msra.mxu0 %v2949_v46  ;;  %2237 = vmatpush1.bf16.msra.mxu1 %v2953_v47 }
 0x192   :  { %2239 = vmatprep.subr.bf16.mxu0 %v2860_v3  ;;  %2271 = vmatprep.subr.bf16.mxu1 %v2864_v8 }
 0x247   :  { %v475_v48 = vpop.f32.mrb[2].mxu0  ;;  %v546_v49 = vpop.f32.mrb[2].mxu1 }
 0x248   :  { %v477_v50 = vpop.f32.mrb[3].mxu0  ;;  %v548_v54 = vpop.f32.mrb[3].mxu1 }
 0x249   :  { %v555_v56 = vcombine.low %v475_v48, %v477_v50  ;;  %v556_v59 = vcombine.low %v546_v49, %v548_v54 }
 0x24b   :  { %v563_v60 = vrot.slane %v555_v56, %v2999_v58  ;;  %v570_v61 = vrot.slane %v556_v59, %v2999_v58 }
 0x24d   :  { %v571_v62 = vcombine.low %v563_v60, %v570_v61  ;;  %v102_v60 = vld [vmem:[%s101_s7] ss:$8 sm:$0xf]  ;;  %s150_s7 = sadd.s32 %s1993_s29, %s147_s28 }
 0x24e   :  { %s151_s8 = scalar_lea.vmem [#allocation6], %s150_s7 }
 0x24f   :  { %v578_v4 = vrot.slane %v571_v62, %v2999_v58 }
 0x251   :  { %v580_v5 = vadd.f32 %v578_v4, %v92_v2 }
 0x253   :  { %v1978_v10 = vmul.f32 -1.442695, %v580_v5  ;;  %v588_v14 = vrot.slane %v580_v5, 2 }
 0x255   :  { %2603 = vpow2.f32 %v1978_v10 }
 0x25f   :  { %v2604_v11 = vpop.eup %2603 }
 0x260   :  { %v584_v12 = vadd.f32 1.0, %v2604_v11 }
 0x262   :  { %2605 = vrcp.f32 %v584_v12 }
 0x263   :  { %2607 = vtanh.f32 %v588_v14 }
 0x26c   :  { %v2606_v15 = vpop.eup %2605 }
 0x26d   :  { %v592_v21 = vrot.slane %v2606_v15, 1  ;;  %v2608_v23 = vpop.eup %2607  ;;  %v598_v30 = vrot.slane %v2606_v15, 3 }
 0x26e   :  { %v595_v24 = vmul.f32 %v2608_v23, %v2606_v15 }
 0x26f   :  { %v594_v28 = vmul.f32 %v592_v21, %v3004_v38 }
 0x271   :  { %v3049_v29 = vadd.f32 %v595_v24, %v594_v28  ;;  %v3098_v24 = vsub.s32 0, %v2996_v55 }
 0x273   :  { %2609 = vtanh.f32 %v3049_v29 }
 0x27d   :  { %v2610_v32 = vpop.eup %2609 }
 0x27e   :  { %v3052_v33 = vmul.f32 %v2610_v32, %v598_v30 }
 0x280   :  { %666 = vmatmul.mubr.f32.vlgmr.msra.gmra.mrb[4].mxu0 %v3052_v33  ;;  %737 = vmatmul.mubr.f32.vlgmr.msra.gmra.mrb[4].mxu1 %v3052_v33  ;;  %v1757_v32 = vrot.slane %v3052_v33, %v3098_v24 }
 0x281   :  { %2241 = vmatpush1.bf16.msra.mxu0 %v2866_v9  ;;  %2273 = vmatpush1.bf16.msra.mxu1 %v2869_v13 }
 0x282   :  { %2243 = vmatprep.subr.bf16.mxu0 %v2873_v17  ;;  %2275 = vmatprep.subr.bf16.mxu1 %v2875_v18 }
 0x283   :  { %857 = vmatprep.mubr.f32.mxu0 %v2777_v7  ;;  %928 = vmatprep.mubr.f32.mxu1 %v2777_v7 }
 0x285   :  { %2245 = vmatpush1.bf16.msra.mxu0 %v2878_v22  ;;  %2277 = vmatpush1.bf16.msra.mxu1 %v2882_v26 }
 0x286   :  { %2247 = vmatprep.subr.bf16.mxu0 %v2884_v27  ;;  %2279 = vmatprep.subr.bf16.mxu1 %v2886_v31 }
 0x289   :  { %2249 = vmatpush1.bf16.msra.mxu0 %v2889_v35  ;;  %2281 = vmatpush1.bf16.msra.mxu1 %v2893_v39 }
 0x28a   :  { %2251 = vmatprep.subr.bf16.mxu0 %v2895_v40  ;;  %2283 = vmatprep.subr.bf16.mxu1 %v2898_v44 }
 0x28d   :  { %2253 = vmatpush1.bf16.msra.mxu0 %v2901_v51  ;;  %2285 = vmatpush1.bf16.msra.mxu1 %v2905_v52 }
 0x28e   :  { %2255 = vmatprep.subr.bf16.mxu0 %v2907_v53  ;;  %2287 = vmatprep.subr.bf16.mxu1 %v2910_v57 }
 0x291   :  { %2257 = vmatpush1.bf16.msra.mxu0 %v2913_v63  ;;  %2289 = vmatpush1.bf16.msra.mxu1 %v2917_v0 }
 0x292   :  { %2259 = vmatprep.subr.bf16.mxu0 %v2919_v1  ;;  %2291 = vmatprep.subr.bf16.mxu1 %v2922_v6 }
 0x295   :  { %2261 = vmatpush1.bf16.msra.mxu0 %v2925_v16  ;;  %2293 = vmatpush1.bf16.msra.mxu1 %v2929_v19 }
 0x296   :  { %2263 = vmatprep.subr.bf16.mxu0 %v2931_v20  ;;  %2295 = vmatprep.subr.bf16.mxu1 %v2934_v25 }
 0x299   :  { %2265 = vmatpush1.bf16.msra.mxu0 %v2937_v34  ;;  %2297 = vmatpush1.bf16.msra.mxu1 %v2941_v36 }
 0x29a   :  { %2267 = vmatprep.subr.bf16.mxu0 %v2943_v37  ;;  %2299 = vmatprep.subr.bf16.mxu1 %v2946_v42 }
 0x29d   :  { %2269 = vmatpush1.bf16.msra.mxu0 %v2949_v46  ;;  %2301 = vmatpush1.bf16.msra.mxu1 %v2953_v47 }
 0x29e   :  { %2303 = vmatprep.subr.bf16.mxu0 %v2860_v3  ;;  %2335 = vmatprep.subr.bf16.mxu1 %v2864_v8 }
 0x353   :  { %v667_v38 = vpop.f32.mrb[4].mxu0  ;;  %v738_v41 = vpop.f32.mrb[4].mxu1 }
 0x354   :  { %v669_v43 = vpop.f32.mrb[5].mxu0  ;;  %v740_v48 = vpop.f32.mrb[5].mxu1 }
 0x355   :  { %v747_v49 = vcombine.low %v667_v38, %v669_v43  ;;  %v748_v50 = vcombine.low %v738_v41, %v740_v48 }
 0x357   :  { %v755_v54 = vrot.slane %v747_v49, %v2999_v58  ;;  %v762_v56 = vrot.slane %v748_v50, %v2999_v58 }
 0x359   :  { %v763_v59 = vcombine.low %v755_v54, %v762_v56 }
 0x35b   :  { %v770_v61 = vrot.slane %v763_v59, %v2999_v58 }
 0x35d   :  { %v772_v62 = vadd.f32 %v770_v61, %v102_v60  ;;  %v112_v60 = vld [vmem:[%s111_s13] ss:$8 sm:$0xf] }
 0x35f   :  { %v1979_v2 = vmul.f32 -1.442695, %v772_v62  ;;  %v780_v10 = vrot.slane %v772_v62, 2 }
 0x361   :  { %2611 = vpow2.f32 %v1979_v2 }
 0x36b   :  { %v2612_v4 = vpop.eup %2611 }
 0x36c   :  { %v776_v5 = vadd.f32 1.0, %v2612_v4 }
 0x36e   :  { %2613 = vrcp.f32 %v776_v5 }
 0x36f   :  { %2615 = vtanh.f32 %v780_v10 }
 0x378   :  { %v2614_v11 = vpop.eup %2613 }
 0x379   :  { %v784_v12 = vrot.slane %v2614_v11, 1  ;;  %v2616_v14 = vpop.eup %2615  ;;  %v790_v28 = vrot.slane %v2614_v11, 3 }
 0x37a   :  { %v787_v15 = vmul.f32 %v2616_v14, %v2614_v11 }
 0x37b   :  { %v786_v21 = vmul.f32 %v784_v12, %v3049_v29  ;;  %v1796_v29 = vsel %vm1795_vm0, %v3007_v45, %v1757_v32 }
 0x37d   :  { %v3094_v23 = vadd.f32 %v787_v15, %v786_v21 }
 0x37f   :  { %2617 = vtanh.f32 %v3094_v23 }
 0x389   :  { %v2618_v30 = vpop.eup %2617 }
 0x38a   :  { %v792_v38 = vmul.f32 %v2618_v30, %v790_v28 }
 0x38c   :  { %858 = vmatmul.mubr.f32.vlgmr.msra.gmra.mrb[6].mxu0 %v792_v38  ;;  %v1763_v41 = vrot.slane %v792_v38, %v3098_v24  ;;  %929 = vmatmul.mubr.f32.vlgmr.msra.gmra.mrb[6].mxu1 %v792_v38 }
 0x38d   :  { %2305 = vmatpush1.bf16.msra.mxu0 %v2866_v9  ;;  %2337 = vmatpush1.bf16.msra.mxu1 %v2869_v13 }
 0x38e   :  { %2307 = vmatprep.subr.bf16.mxu0 %v2873_v17  ;;  %2339 = vmatprep.subr.bf16.mxu1 %v2875_v18  ;;  %v3108_v55 = vsel %vm1797_vm1, %v1796_v29, %v1763_v41 }
 0x38f   :  { %1049 = vmatprep.mubr.f32.mxu0 %v2777_v7  ;;  %1120 = vmatprep.mubr.f32.mxu1 %v2777_v7 }
 0x391   :  { %2309 = vmatpush1.bf16.msra.mxu0 %v2878_v22  ;;  %2341 = vmatpush1.bf16.msra.mxu1 %v2882_v26 }
 0x392   :  { %2311 = vmatprep.subr.bf16.mxu0 %v2884_v27  ;;  %2343 = vmatprep.subr.bf16.mxu1 %v2886_v31 }
 0x395   :  { %2313 = vmatpush1.bf16.msra.mxu0 %v2889_v35  ;;  %2345 = vmatpush1.bf16.msra.mxu1 %v2893_v39 }
 0x396   :  { %2315 = vmatprep.subr.bf16.mxu0 %v2895_v40  ;;  %2347 = vmatprep.subr.bf16.mxu1 %v2898_v44 }
 0x399   :  { %2317 = vmatpush1.bf16.msra.mxu0 %v2901_v51  ;;  %2349 = vmatpush1.bf16.msra.mxu1 %v2905_v52 }
 0x39a   :  { %2319 = vmatprep.subr.bf16.mxu0 %v2907_v53  ;;  %2351 = vmatprep.subr.bf16.mxu1 %v2910_v57 }
 0x39d   :  { %2321 = vmatpush1.bf16.msra.mxu0 %v2913_v63  ;;  %2353 = vmatpush1.bf16.msra.mxu1 %v2917_v0 }
 0x39e   :  { %2323 = vmatprep.subr.bf16.mxu0 %v2919_v1  ;;  %2355 = vmatprep.subr.bf16.mxu1 %v2922_v6 }
 0x3a1   :  { %2325 = vmatpush1.bf16.msra.mxu0 %v2925_v16  ;;  %2357 = vmatpush1.bf16.msra.mxu1 %v2929_v19 }
 0x3a2   :  { %2327 = vmatprep.subr.bf16.mxu0 %v2931_v20  ;;  %2359 = vmatprep.subr.bf16.mxu1 %v2934_v25 }
 0x3a5   :  { %2329 = vmatpush1.bf16.msra.mxu0 %v2937_v34  ;;  %2361 = vmatpush1.bf16.msra.mxu1 %v2941_v36 }
 0x3a6   :  { %2331 = vmatprep.subr.bf16.mxu0 %v2943_v37  ;;  %2363 = vmatprep.subr.bf16.mxu1 %v2946_v42 }
 0x3a9   :  { %2333 = vmatpush1.bf16.msra.mxu0 %v2949_v46  ;;  %2365 = vmatpush1.bf16.msra.mxu1 %v2953_v47 }
 0x3aa   :  { %2367 = vmatprep.subr.bf16.mxu0 %v2860_v3  ;;  %2399 = vmatprep.subr.bf16.mxu1 %v2864_v8 }
 0x45f   :  { %v859_v45 = vpop.f32.mrb[6].mxu0  ;;  %v930_v33 = vpop.f32.mrb[6].mxu1 }
 0x460   :  { %v861_v43 = vpop.f32.mrb[7].mxu0  ;;  %v932_v48 = vpop.f32.mrb[7].mxu1 }
 0x461   :  { %v939_v49 = vcombine.low %v859_v45, %v861_v43  ;;  %v940_v50 = vcombine.low %v930_v33, %v932_v48 }
 0x463   :  { %v947_v54 = vrot.slane %v939_v49, %v2999_v58  ;;  %v954_v56 = vrot.slane %v940_v50, %v2999_v58 }
 0x465   :  { %v955_v59 = vcombine.low %v947_v54, %v954_v56  ;;  %v122_v56 = vld [vmem:[%s121_s3] ss:$8 sm:$0xf] }
 0x467   :  { %v962_v61 = vrot.slane %v955_v59, %v2999_v58 }
 0x469   :  { %v964_v62 = vadd.f32 %v962_v61, %v112_v60 }
 0x46b   :  { %v1980_v2 = vmul.f32 -1.442695, %v964_v62  ;;  %v972_v10 = vrot.slane %v964_v62, 2 }
 0x46d   :  { %2619 = vpow2.f32 %v1980_v2 }
 0x477   :  { %v2620_v4 = vpop.eup %2619 }
 0x478   :  { %v968_v5 = vadd.f32 1.0, %v2620_v4 }
 0x47a   :  { %2621 = vrcp.f32 %v968_v5 }
 0x47b   :  { %2623 = vtanh.f32 %v972_v10 }
 0x484   :  { %v2622_v11 = vpop.eup %2621 }
 0x485   :  { %v976_v12 = vrot.slane %v2622_v11, 1  ;;  %v2624_v14 = vpop.eup %2623  ;;  %v982_v30 = vrot.slane %v2622_v11, 3 }
 0x486   :  { %v979_v15 = vmul.f32 %v2624_v14, %v2622_v11 }
 0x487   :  { %v978_v21 = vmul.f32 %v976_v12, %v3094_v23 }
 0x489   :  { %v3144_v28 = vadd.f32 %v979_v15, %v978_v21 }
 0x48b   :  { %2625 = vtanh.f32 %v3144_v28 }
 0x495   :  { %v2626_v32 = vpop.eup %2625 }
 0x496   :  { %v984_v38 = vmul.f32 %v2626_v32, %v982_v30 }
 0x498   :  { %1050 = vmatmul.mubr.f32.vlgmr.msra.gmra.mrb[8].mxu0 %v984_v38  ;;  %v1769_v41 = vrot.slane %v984_v38, %v3098_v24  ;;  %1121 = vmatmul.mubr.f32.vlgmr.msra.gmra.mrb[8].mxu1 %v984_v38 }
 0x499   :  { %2369 = vmatpush1.bf16.msra.mxu0 %v2866_v9  ;;  %2401 = vmatpush1.bf16.msra.mxu1 %v2869_v13 }
 0x49a   :  { %2371 = vmatprep.subr.bf16.mxu0 %v2873_v17  ;;  %2403 = vmatprep.subr.bf16.mxu1 %v2875_v18  ;;  %v3153_v23 = vsel %vm1799_vm2, %v3108_v55, %v1769_v41 }
 0x49b   :  { %1241 = vmatprep.mubr.f32.mxu0 %v2777_v7  ;;  %1312 = vmatprep.mubr.f32.mxu1 %v2777_v7 }
 0x49d   :  { %2373 = vmatpush1.bf16.msra.mxu0 %v2878_v22  ;;  %2405 = vmatpush1.bf16.msra.mxu1 %v2882_v26 }
 0x49e   :  { %2375 = vmatprep.subr.bf16.mxu0 %v2884_v27  ;;  %2407 = vmatprep.subr.bf16.mxu1 %v2886_v31 }
 0x4a1   :  { %2377 = vmatpush1.bf16.msra.mxu0 %v2889_v35  ;;  %2409 = vmatpush1.bf16.msra.mxu1 %v2893_v39 }
 0x4a2   :  { %2379 = vmatprep.subr.bf16.mxu0 %v2895_v40  ;;  %2411 = vmatprep.subr.bf16.mxu1 %v2898_v44 }
 0x4a5   :  { %2381 = vmatpush1.bf16.msra.mxu0 %v2901_v51  ;;  %2413 = vmatpush1.bf16.msra.mxu1 %v2905_v52 }
 0x4a6   :  { %2383 = vmatprep.subr.bf16.mxu0 %v2907_v53  ;;  %2415 = vmatprep.subr.bf16.mxu1 %v2910_v57 }
 0x4a9   :  { %2385 = vmatpush1.bf16.msra.mxu0 %v2913_v63  ;;  %2417 = vmatpush1.bf16.msra.mxu1 %v2917_v0 }
 0x4aa   :  { %2387 = vmatprep.subr.bf16.mxu0 %v2919_v1  ;;  %2419 = vmatprep.subr.bf16.mxu1 %v2922_v6 }
 0x4ad   :  { %2389 = vmatpush1.bf16.msra.mxu0 %v2925_v16  ;;  %2421 = vmatpush1.bf16.msra.mxu1 %v2929_v19 }
 0x4ae   :  { %2391 = vmatprep.subr.bf16.mxu0 %v2931_v20  ;;  %2423 = vmatprep.subr.bf16.mxu1 %v2934_v25 }
 0x4b1   :  { %2393 = vmatpush1.bf16.msra.mxu0 %v2937_v34  ;;  %2425 = vmatpush1.bf16.msra.mxu1 %v2941_v36 }
 0x4b2   :  { %2395 = vmatprep.subr.bf16.mxu0 %v2943_v37  ;;  %2427 = vmatprep.subr.bf16.mxu1 %v2946_v42 }
 0x4b5   :  { %2397 = vmatpush1.bf16.msra.mxu0 %v2949_v46  ;;  %2429 = vmatpush1.bf16.msra.mxu1 %v2953_v47 }
 0x4b6   :  { %2431 = vmatprep.subr.bf16.mxu0 %v2860_v3  ;;  %2463 = vmatprep.subr.bf16.mxu1 %v2864_v8 }
 0x56b   :  { %v1051_v29 = vpop.f32.mrb[8].mxu0  ;;  %v1122_v55 = vpop.f32.mrb[8].mxu1 }
 0x56c   :  { %v1053_v45 = vpop.f32.mrb[9].mxu0  ;;  %v1124_v33 = vpop.f32.mrb[9].mxu1 }
 0x56d   :  { %v1131_v43 = vcombine.low %v1051_v29, %v1053_v45  ;;  %v1132_v48 = vcombine.low %v1122_v55, %v1124_v33 }
 0x56f   :  { %v1139_v49 = vrot.slane %v1131_v43, %v2999_v58  ;;  %v1146_v50 = vrot.slane %v1132_v48, %v2999_v58 }
 0x571   :  { %v1147_v54 = vcombine.low %v1139_v49, %v1146_v50 }
 0x573   :  { %v1154_v59 = vrot.slane %v1147_v54, %v2999_v58 }
 0x575   :  { %v1156_v60 = vadd.f32 %v1154_v59, %v122_v56 }
 0x577   :  { %v1981_v61 = vmul.f32 -1.442695, %v1156_v60  ;;  %v1164_v4 = vrot.slane %v1156_v60, 2 }
 0x579   :  { %2627 = vpow2.f32 %v1981_v61 }
 0x583   :  { %v2628_v62 = vpop.eup %2627 }
 0x584   :  { %v1160_v2 = vadd.f32 1.0, %v2628_v62 }
 0x586   :  { %2629 = vrcp.f32 %v1160_v2 }
 0x587   :  { %2631 = vtanh.f32 %v1164_v4 }
 0x590   :  { %v2630_v5 = vpop.eup %2629 }
 0x591   :  { %v1168_v10 = vrot.slane %v2630_v5, 1  ;;  %v2632_v11 = vpop.eup %2631  ;;  %v1174_v21 = vrot.slane %v2630_v5, 3 }
 0x592   :  { %v1171_v12 = vmul.f32 %v2632_v11, %v2630_v5 }
 0x593   :  { %v1170_v14 = vmul.f32 %v1168_v10, %v3144_v28 }
 0x595   :  { %v3189_v15 = vadd.f32 %v1171_v12, %v1170_v14 }
 0x597   :  { %2633 = vtanh.f32 %v3189_v15 }
 0x5a1   :  { %v2634_v30 = vpop.eup %2633 }
 0x5a2   :  { %v1176_v32 = vmul.f32 %v2634_v30, %v1174_v21  ;;  %v2779_v30 = vmov 0.0|0.0  }
 0x5a4   :  { %1242 = vmatmul.mubr.f32.vlgmr.msra.gmra.mrb[10].mxu0 %v1176_v32  ;;  %v1775_v38 = vrot.slane %v1176_v32, %v3098_v24  ;;  %1313 = vmatmul.mubr.f32.vlgmr.msra.gmra.mrb[10].mxu1 %v1176_v32  ;;  %v1811_v32 = vld [vmem:[#allocation9 + $0x10] sm:$0xff] }
 0x5a5   :  { %2433 = vmatpush1.bf16.msra.mxu0 %v2866_v9  ;;  %2465 = vmatpush1.bf16.msra.mxu1 %v2869_v13 }
 0x5a6   :  { %2435 = vmatprep.subr.bf16.mxu0 %v2873_v17  ;;  %2467 = vmatprep.subr.bf16.mxu1 %v2875_v18  ;;  %v3198_v28 = vsel %vm1801_vm3, %v3153_v23, %v1775_v38  ;;  %v1812_v38 = vld [vmem:[#allocation9 + $0x18] sm:$0xff] }
 0x5a7   :  { %1433 = vmatprep.mubr.f32.mxu0 %v2777_v7  ;;  %1504 = vmatprep.mubr.f32.mxu1 %v2777_v7 }
 0x5a9   :  { %2437 = vmatpush1.bf16.msra.mxu0 %v2878_v22  ;;  %2469 = vmatpush1.bf16.msra.mxu1 %v2882_v26 }
 0x5aa   :  { %2439 = vmatprep.subr.bf16.mxu0 %v2884_v27  ;;  %2471 = vmatprep.subr.bf16.mxu1 %v2886_v31 }
 0x5ad   :  { %2441 = vmatpush1.bf16.msra.mxu0 %v2889_v35  ;;  %2473 = vmatpush1.bf16.msra.mxu1 %v2893_v39 }
 0x5ae   :  { %2443 = vmatprep.subr.bf16.mxu0 %v2895_v40  ;;  %2475 = vmatprep.subr.bf16.mxu1 %v2898_v44 }
 0x5b1   :  { %2445 = vmatpush1.bf16.msra.mxu0 %v2901_v51  ;;  %2477 = vmatpush1.bf16.msra.mxu1 %v2905_v52 }
 0x5b2   :  { %2447 = vmatprep.subr.bf16.mxu0 %v2907_v53  ;;  %2479 = vmatprep.subr.bf16.mxu1 %v2910_v57 }
 0x5b5   :  { %2449 = vmatpush1.bf16.msra.mxu0 %v2913_v63  ;;  %2481 = vmatpush1.bf16.msra.mxu1 %v2917_v0 }
 0x5b6   :  { %2451 = vmatprep.subr.bf16.mxu0 %v2919_v1  ;;  %2483 = vmatprep.subr.bf16.mxu1 %v2922_v6 }
 0x5b9   :  { %2453 = vmatpush1.bf16.msra.mxu0 %v2925_v16  ;;  %2485 = vmatpush1.bf16.msra.mxu1 %v2929_v19 }
 0x5ba   :  { %2455 = vmatprep.subr.bf16.mxu0 %v2931_v20  ;;  %2487 = vmatprep.subr.bf16.mxu1 %v2934_v25 }
 0x5bd   :  { %2457 = vmatpush1.bf16.msra.mxu0 %v2937_v34  ;;  %2489 = vmatpush1.bf16.msra.mxu1 %v2941_v36 }
 0x5be   :  { %2459 = vmatprep.subr.bf16.mxu0 %v2943_v37  ;;  %2491 = vmatprep.subr.bf16.mxu1 %v2946_v42 }
 0x5c1   :  { %2461 = vmatpush1.bf16.msra.mxu0 %v2949_v46  ;;  %2493 = vmatpush1.bf16.msra.mxu1 %v2953_v47 }
 0x5c2   :  { %2495 = vmatprep.subr.bf16.mxu0 %v2860_v3  ;;  %2527 = vmatprep.subr.bf16.mxu1 %v2864_v8  ;;  %v132_v3 = vld [vmem:[%s131_s19] ss:$8 sm:$0xf] }
 0x677   :  { %v1243_v41 = vpop.f32.mrb[10].mxu0  ;;  %v1314_v23 = vpop.f32.mrb[10].mxu1 }
 0x678   :  { %v1245_v29 = vpop.f32.mrb[11].mxu0  ;;  %v1316_v55 = vpop.f32.mrb[11].mxu1 }
 0x679   :  { %v1323_v45 = vcombine.low %v1243_v41, %v1245_v29  ;;  %v1324_v33 = vcombine.low %v1314_v23, %v1316_v55  ;;  %v1813_v41 = vld [vmem:[#allocation9 + $0x20] sm:$0xff]  ;;  %v1814_v23 = vld [vmem:[#allocation9 + $0x28] sm:$0xff]  ;;  %v1815_v55 = vld [vmem:[#allocation9 + $0x30] sm:$0xff] }
 0x67a   :  { %v2565_v29 = vpack.c.bf16 %v1814_v23, %v1813_v41 }
 0x67b   :  { %v1331_v43 = vrot.slane %v1323_v45, %v2999_v58  ;;  %v1338_v48 = vrot.slane %v1324_v33, %v2999_v58  ;;  %v1816_v45 = vld [vmem:[#allocation9 + $0x38] sm:$0xff] }
 0x67c   :  { %v2568_v33 = vpack.c.bf16 %v1816_v45, %v1815_v55 }
 0x67d   :  { %v1339_v49 = vcombine.low %v1331_v43, %v1338_v48  ;;  %v1817_v43 = vld [vmem:[#allocation9 + $0x40] sm:$0xff]  ;;  %v1818_v48 = vld [vmem:[#allocation9 + $0x48] sm:$0xff] }
 0x67f   :  { %v1346_v8 = vrot.slane %v1339_v49, %v2999_v58  ;;  %v2571_v49 = vpack.c.bf16 %v1818_v48, %v1817_v43 }
 0x681   :  { %v1348_v50 = vadd.f32 %v1346_v8, %v132_v3  ;;  %v1819_v3 = vld [vmem:[#allocation9 + $0x50] sm:$0xff]  ;;  %v1820_v8 = vld [vmem:[#allocation9 + $0x58] sm:$0xff] }
 0x683   :  { %v1982_v54 = vmul.f32 -1.442695, %v1348_v50  ;;  %v1356_v60 = vrot.slane %v1348_v50, 2  ;;  %v2574_v50 = vpack.c.bf16 %v1820_v8, %v1819_v3 }
 0x685   :  { %2635 = vpow2.f32 %v1982_v54  ;;  %v1821_v54 = vld [vmem:[#allocation9 + $0x60] sm:$0xff] }
 0x68f   :  { %v2636_v56 = vpop.eup %2635 }
 0x690   :  { %v1352_v59 = vadd.f32 1.0, %v2636_v56  ;;  %v1822_v56 = vld [vmem:[#allocation9 + $0x68] sm:$0xff] }
 0x692   :  { %2637 = vrcp.f32 %v1352_v59  ;;  %v2577_v59 = vpack.c.bf16 %v1822_v56, %v1821_v54 }
 0x693   :  { %2639 = vtanh.f32 %v1356_v60  ;;  %v1823_v60 = vld [vmem:[#allocation9 + $0x70] sm:$0xff] }
 0x69c   :  { %v2638_v61 = vpop.eup %2637 }
 0x69d   :  { %v1360_v62 = vrot.slane %v2638_v61, 1  ;;  %v2640_v2 = vpop.eup %2639  ;;  %v1366_v11 = vrot.slane %v2638_v61, 3 }
 0x69e   :  { %v1363_v4 = vmul.f32 %v2640_v2, %v2638_v61  ;;  %v1824_v61 = vld [vmem:[#allocation9 + $0x78] sm:$0xff] }
 0x69f   :  { %v1362_v5 = vmul.f32 %v1360_v62, %v3189_v15  ;;  %v2580_v62 = vpack.c.bf16 %v1824_v61, %v1823_v60 }
 0x6a1   :  { %v3234_v10 = vadd.f32 %v1363_v4, %v1362_v5 }
 0x6a3   :  { %2641 = vtanh.f32 %v3234_v10 }
 0x6ad   :  { %v2642_v12 = vpop.eup %2641 }
 0x6ae   :  { %v1368_v14 = vmul.f32 %v2642_v12, %v1366_v11 }
 0x6b0   :  { %1434 = vmatmul.mubr.f32.vlgmr.msra.gmra.mrb[12].mxu0 %v1368_v14  ;;  %v1781_v21 = vrot.slane %v1368_v14, %v3098_v24  ;;  %1505 = vmatmul.mubr.f32.vlgmr.msra.gmra.mrb[12].mxu1 %v1368_v14 }
 0x6b1   :  { %2497 = vmatpush1.bf16.msra.mxu0 %v2866_v9  ;;  %2529 = vmatpush1.bf16.msra.mxu1 %v2869_v13 }
 0x6b2   :  { %2499 = vmatprep.subr.bf16.mxu0 %v2873_v17  ;;  %2531 = vmatprep.subr.bf16.mxu1 %v2875_v18  ;;  %v3243_v15 = vsel %vm1803_vm4, %v3198_v28, %v1781_v21  ;;  %v2562_v28 = vpack.c.bf16 %v1812_v38, %v1811_v32 }
 0x6b3   :  { %1625 = vmatprep.mubr.f32.mxu0 %v2777_v7  ;;  %1696 = vmatprep.mubr.f32.mxu1 %v2777_v7 }
 0x6b5   :  { %2501 = vmatpush1.bf16.msra.mxu0 %v2878_v22  ;;  %2533 = vmatpush1.bf16.msra.mxu1 %v2882_v26 }
 0x6b6   :  { %2503 = vmatprep.subr.bf16.mxu0 %v2884_v27  ;;  %2535 = vmatprep.subr.bf16.mxu1 %v2886_v31 }
 0x6b9   :  { %2505 = vmatpush1.bf16.msra.mxu0 %v2889_v35  ;;  %2537 = vmatpush1.bf16.msra.mxu1 %v2893_v39  ;;  %v142_v39 = vld [vmem:[%s141_s26] ss:$8 sm:$0xf] }
 0x6ba   :  { %2507 = vmatprep.subr.bf16.mxu0 %v2895_v40  ;;  %2539 = vmatprep.subr.bf16.mxu1 %v2898_v44 }
 0x6bd   :  { %2509 = vmatpush1.bf16.msra.mxu0 %v2901_v51  ;;  %2541 = vmatpush1.bf16.msra.mxu1 %v2905_v52 }
 0x6be   :  { %2511 = vmatprep.subr.bf16.mxu0 %v2907_v53  ;;  %2543 = vmatprep.subr.bf16.mxu1 %v2910_v57 }
 0x6c1   :  { %2513 = vmatpush1.bf16.msra.mxu0 %v2913_v63  ;;  %2545 = vmatpush1.bf16.msra.mxu1 %v2917_v0 }
 0x6c2   :  { %2515 = vmatprep.subr.bf16.mxu0 %v2919_v1  ;;  %2547 = vmatprep.subr.bf16.mxu1 %v2922_v6 }
 0x6c5   :  { %2517 = vmatpush1.bf16.msra.mxu0 %v2925_v16  ;;  %2549 = vmatpush1.bf16.msra.mxu1 %v2929_v19 }
 0x6c6   :  { %2519 = vmatprep.subr.bf16.mxu0 %v2931_v20  ;;  %2551 = vmatprep.subr.bf16.mxu1 %v2934_v25 }
 0x6c9   :  { %2521 = vmatpush1.bf16.msra.mxu0 %v2937_v34  ;;  %2553 = vmatpush1.bf16.msra.mxu1 %v2941_v36 }
 0x6ca   :  { %2523 = vmatprep.subr.bf16.mxu0 %v2943_v37  ;;  %2555 = vmatprep.subr.bf16.mxu1 %v2946_v42  ;;  %v1809_v42 = vld [vmem:[#allocation9] sm:$0xff] }
 0x6cd   :  { %2525 = vmatpush1.bf16.msra.mxu0 %v2949_v46  ;;  %2557 = vmatpush1.bf16.msra.mxu1 %v2953_v47  ;;  %v1810_v46 = vld [vmem:[#allocation9 + $0x8] sm:$0xff] }
 0x6ce   :  { %v2559_v47 = vpack.c.bf16 %v1810_v46, %v1809_v42  ;;  %2558 = vmatprep.subr.bf16.mxu0 %v2779_v30 }
 0x783   :  { %v1435_v9 = vpop.f32.mrb[12].mxu0  ;;  %v1506_v13 = vpop.f32.mrb[12].mxu1 }
 0x784   :  { %v1437_v17 = vpop.f32.mrb[13].mxu0  ;;  %v1508_v18 = vpop.f32.mrb[13].mxu1 }
 0x785   :  { %v1515_v22 = vcombine.low %v1435_v9, %v1437_v17  ;;  %v1516_v26 = vcombine.low %v1506_v13, %v1508_v18 }
 0x787   :  { %v1523_v27 = vrot.slane %v1515_v22, %v2999_v58  ;;  %v1530_v31 = vrot.slane %v1516_v26, %v2999_v58 }
 0x789   :  { %v1531_v35 = vcombine.low %v1523_v27, %v1530_v31 }
 0x78b   :  { %v1538_v40 = vrot.slane %v1531_v35, %v2999_v58 }
 0x78d   :  { %v1540_v44 = vadd.f32 %v1538_v40, %v142_v39 }
 0x78f   :  { %v1983_v51 = vmul.f32 -1.442695, %v1540_v44  ;;  %v1548_v57 = vrot.slane %v1540_v44, 2 }
 0x791   :  { %2643 = vpow2.f32 %v1983_v51 }
 0x79b   :  { %v2644_v52 = vpop.eup %2643 }
 0x79c   :  { %v1544_v53 = vadd.f32 1.0, %v2644_v52 }
 0x79e   :  { %2645 = vrcp.f32 %v1544_v53 }
 0x79f   :  { %2647 = vtanh.f32 %v1548_v57 }
 0x7a8   :  { %v2646_v63 = vpop.eup %2645 }
 0x7a9   :  { %v1552_v0 = vrot.slane %v2646_v63, 1  ;;  %v2648_v1 = vpop.eup %2647  ;;  %v1558_v20 = vrot.slane %v2646_v63, 3 }
 0x7aa   :  { %v1555_v6 = vmul.f32 %v2648_v1, %v2646_v63  ;;  %v1985_v63 = vld [vmem:[%s3310_s4] ss:$0 sm:$0xff]  ;;  %s2739_s4 = scalar_lea.vmem %s1920_s12, 128 }
 0x7ab   :  { %v1554_v16 = vmul.f32 %v1552_v0, %v3234_v10  ;;  %p2740_p13 = scmp.ne.s32.totalorder %s1920_s12, %s2739_s4  ;;  %p2745_p1 = scmp.lt.s32.totalorder %s2739_s4, %s2739_s4 }
 0x7ad   :  { %v3277_v19 = vadd.f32 %v1555_v6, %v1554_v16  ;;  %p2746_p2 = por %p2745_p1, %p2744_p0 }
 0x7af   :  { %2649 = vtanh.f32 %v3277_v19  ;;  %p2747_p3 = pnand %p2746_p2, %p2740_p13 }
 0x7b9   :  { %v2650_v25 = vpop.eup %2649 }
 0x7ba   :  { %v1560_v34 = vmul.f32 %v2650_v25, %v1558_v20 }
 0x7bc   :  { %1626 = vmatmul.mubr.f32.vlgmr.msra.gmra.mrb[14].mxu0 %v1560_v34  ;;  %1697 = vmatmul.mubr.f32.vlgmr.msra.gmra.mrb[14].mxu1 %v1560_v34  ;;  %v1787_v36 = vrot.slane %v1560_v34, %v3098_v24 }
 0x7bd   :  { %2560 = vmatpush3.bf16.msra.mxu0 %v2559_v47  ;;  %2043 = vmatprep.mubr.msk.f32.mxu0 %vm2780_vm6, %v2777_v7 }
 0x7be   :  { %v3282_v37 = vsel %vm1805_vm5, %v3243_v15, %v1787_v36  ;;  %2561 = vmatprep.subr.bf16.mxu0 %v2779_v30  ;;  %v152_v15 = vld [vmem:[%s151_s8] ss:$8 sm:$0xf] }
 0x7c1   :  { %2563 = vmatpush3.bf16.msra.mxu0 %v2562_v28 }
 0x7c2   :  { %2564 = vmatprep.subr.bf16.mxu0 %v2779_v30 }
 0x7c5   :  { %2566 = vmatpush3.bf16.msra.mxu0 %v2565_v29 }
 0x7c6   :  { %2567 = vmatprep.subr.bf16.mxu0 %v2779_v30 }
 0x7c9   :  { %2569 = vmatpush3.bf16.msra.mxu0 %v2568_v33 }
 0x7ca   :  { %2570 = vmatprep.subr.bf16.mxu0 %v2779_v30 }
 0x7cd   :  { %2572 = vmatpush3.bf16.msra.mxu0 %v2571_v49 }
 0x7ce   :  { %2573 = vmatprep.subr.bf16.mxu0 %v2779_v30 }
 0x7d1   :  { %2575 = vmatpush3.bf16.msra.mxu0 %v2574_v50 }
 0x7d2   :  { %2576 = vmatprep.subr.bf16.mxu0 %v2779_v30 }
 0x7d5   :  { %2578 = vmatpush3.bf16.msra.mxu0 %v2577_v59 }
 0x7d6   :  { %2579 = vmatprep.subr.bf16.mxu0 %v2779_v30 }
 0x7d9   :  { %2581 = vmatpush3.bf16.msra.mxu0 %v2580_v62 }
 0x88f   :  { %v1627_v7 = vpop.f32.mrb[14].mxu0  ;;  %v1698_v2 = vpop.f32.mrb[14].mxu1 }
 0x890   :  { %v1629_v4 = vpop.f32.mrb[15].mxu0  ;;  %v1700_v5 = vpop.f32.mrb[15].mxu1 }
 0x891   :  { %v1707_v10 = vcombine.low %v1627_v7, %v1629_v4  ;;  %v1708_v11 = vcombine.low %v1698_v2, %v1700_v5 }
 0x893   :  { %v1715_v12 = vrot.slane %v1707_v10, %v2999_v58  ;;  %v1722_v14 = vrot.slane %v1708_v11, %v2999_v58 }
 0x895   :  { %v1723_v21 = vcombine.low %v1715_v12, %v1722_v14 }
 0x897   :  { %v1730_v9 = vrot.slane %v1723_v21, %v2999_v58 }
 0x899   :  { %v1732_v13 = vadd.f32 %v1730_v9, %v152_v15 }
 0x89b   :  { %v1984_v17 = vmul.f32 -1.442695, %v1732_v13  ;;  %v1740_v26 = vrot.slane %v1732_v13, 2 }
 0x89d   :  { %2651 = vpow2.f32 %v1984_v17 }
 0x8a7   :  { %v2652_v18 = vpop.eup %2651 }
 0x8a8   :  { %v1736_v22 = vadd.f32 1.0, %v2652_v18 }
 0x8aa   :  { %2653 = vrcp.f32 %v1736_v22 }
 0x8ab   :  { %2655 = vtanh.f32 %v1740_v26 }
 0x8b4   :  { %v2654_v27 = vpop.eup %2653 }
 0x8b5   :  { %v1744_v31 = vrot.slane %v2654_v27, 1  ;;  %v2656_v35 = vpop.eup %2655  ;;  %v1750_v51 = vrot.slane %v2654_v27, 3 }
 0x8b6   :  { %v1747_v39 = vmul.f32 %v2656_v35, %v2654_v27 }
 0x8b7   :  { %v1746_v40 = vmul.f32 %v1744_v31, %v3277_v19 }
 0x8b9   :  { %v1748_v44 = vadd.f32 %v1747_v39, %v1746_v40 }
 0x8bb   :  { %2657 = vtanh.f32 %v1748_v44 }
 0x8c5   :  { %v2658_v52 = vpop.eup %2657 }
 0x8c6   :  { %v1752_v53 = vmul.f32 %v2658_v52, %v1750_v51 }
 0x8c8   :  { %v1793_v58 = vrot.slane %v1752_v53, %v3098_v24 }
 0x8ca   :  { %v1808_v57 = vsel %vm1807_vm7, %v3282_v37, %v1793_v58 }
 0x8cb   :  { %2044 = vmatmul.mubr.f32.vlgmr.msra.gmra.mrb[16].mxu0 %v1808_v57 }
 0x99e   :  { %v1898_v0 = vpop.f32.mrb[16].mxu0 }
 0x99f   :  { %v1899_v1 = vadd.f32 %v1985_v63, %v1898_v0  ;;  %v2045_v6 = vpop.f32.mrb[17].mxu0 }
 0x9a1   :  { %1902 = vmax.xlane.f32.xlu0 %v1899_v1 }
 0xa2e   :  { %v1903_v16 = vpop.xlane.xlu0 %1902 }
 0xa2f   :  { %v1904_v19 = vsub.f32 %v1899_v1, %v1903_v16 }
 0xa31   :  { %v1905_v20 = vmul.f32 1.442695, %v1904_v19 }
 0xa33   :  { %2659 = vpow2.f32 %v1905_v20 }
 0xa3d   :  { %v2660_v25 = vpop.eup %2659 }
 0xa3e   :  { %1907 = vadd.xlane.f32.xlu0 %v2660_v25 }
 0xacb   :  { %v1908_v34 = vpop.xlane.xlu0 %1907 }
 0xacc   :  { %2661 = vlog2.f32 %v1908_v34 }
 0xad6   :  { %v2662_v24 = vpop.eup %2661 }
 0xad7   :  { %v1910_v36 = vmul.f32 0.6931472, %v2662_v24 }
 0xad9   :  { %v1911_v37 = vsub.f32 %v1904_v19, %v1910_v36 }
 0xadb   :  { %1912 = vst [vmem:[#allocation10] sm:$0xff] %v1911_v37 }
 0xadc   :  { %2750 = shalt.err (!%p2747_p3)
}
 0xadd   :  { %s2751_s1 = scalar_lea.hbm %s3311_s5, 128 }
 0xade   :  { %p2752_p4 = scmp.ne.s32.totalorder %s3311_s5, %s2751_s1  ;;  %p2755_p5 = scmp.lt.u32.totalorder %s2751_s1, %s3311_s5 }
 0xae0   :  { %p2757_p6 = pnand %p2755_p5, %p2752_p4 }
 0xae2   :  { %2760 = shalt.err (!%p2757_p6)
}
 0xae3   :  { %1922 = dma.vmem_to_hbm [thread:$0]  %s1920_s12, 128, %s3311_s5, [#allocation4]  }
 0xae4   :  { %2767 = dma.done.wait [#allocation4], 128  }
 0xae5   :  { %2768 = vsyncadd [#allocation4], 4294967168 }
 0xae6   :  { %1926 = vsyncpa [#allocation3], 1 }
 0xae7   :  { %1927 = vsyncpa [#allocation8], 1 }
 0xae8   :  { %1928 = vsyncpa [#allocation4], 1 }
 0xae9   :  { %1929 = vsyncpa [#allocation5], 1 }

</bundles_post_ra>
